<compile_context>
chip_gen: v7x
topology: tpu7x:2x2x1
jax: 0.10.0
libtpu: 0.0.40
codegen_flags: <defaults>
</compile_context>

<pallas_src>
import jax
import jax.numpy as jnp
from jax import lax
from jax.experimental import pallas as pl
from jax.experimental.pallas import tpu as pltpu


# ----------------------------- Pallas kernel --------------------------------
def gru_bidi_chunk_kernel(emb_f_ref, emb_b_ref, w_ih_ref, w_hh_ref,
                          bx_ref, bhn_ref, out_ref, hf_ref, hb_ref):
    """One T-chunk of the fused bidirectional GRU.

    emb_f_ref: (Tc*B, D) bf16  time-major flattened emb, forward chunk t
    emb_b_ref: (Tc*B, D) bf16  same array, chunk (num_chunks-1-t)  (bwd dir)
    w_ih_ref : (2, D, 3H) bf16 per-direction input weights  [r|z|n]
    w_hh_ref : (2, H, 3H) bf16 per-direction recurrent weights
    bx_ref   : (2, 1, 3H) f32  b_ih + b_hh(r,z) pre-folded; n col = b_in only
    bhn_ref  : (2, 1, H)  f32  n-gate recurrent bias (stays inside r*(...))
    out_ref  : (B, H)     f32  max(h_fwd_final, h_bwd_final), written at last t
    hf_ref/hb_ref: (B, H) f32  VMEM carries for the two directions
    """
    B, H = out_ref.shape
    TcB, _ = emb_f_ref.shape
    Tc = TcB // B
    t = pl.program_id(0)

    @pl.when(t == 0)
    def _init():
        hf_ref[...] = jnp.zeros_like(hf_ref)
        hb_ref[...] = jnp.zeros_like(hb_ref)

    # Chunk input projection: two well-shaped (Tc*B, D) x (D, 3H) bf16 MXU dots
    # with fp32 accumulation; gate tensor never round-trips HBM.
    gx_f = jnp.dot(emb_f_ref[...], w_ih_ref[0],
                   preferred_element_type=jnp.float32) + bx_ref[0]
    gx_b = jnp.dot(emb_b_ref[...], w_ih_ref[1],
                   preferred_element_type=jnp.float32) + bx_ref[1]

    # Hoist weight loads / bias broadcasts out of the recurrence.
    w_hh_f = w_hh_ref[0]                                  # (H, 3H) bf16
    w_hh_b = w_hh_ref[1]
    bhn_f = jnp.broadcast_to(bhn_ref[0], (B, H))          # (B, H) f32, once
    bhn_b = jnp.broadcast_to(bhn_ref[1], (B, H))

    h_f = hf_ref[...]
    h_b = hb_ref[...]
    # Static unroll over the chunk == partial unroll of the full-T recurrence;
    # the grid axis is the live-range boundary for long sequences.
    for s in range(Tc):
        gxf = gx_f[s * B:(s + 1) * B, :]                  # fwd time t*Tc+s
        gxb = gx_b[(Tc - 1 - s) * B:(Tc - s) * B, :]      # bwd: reversed chunk
        # Two independent per-direction dots -> overlap in the MXU pipeline.
        ghf = jnp.dot(h_f.astype(w_hh_f.dtype), w_hh_f,
                      preferred_element_type=jnp.float32)
        ghb = jnp.dot(h_b.astype(w_hh_b.dtype), w_hh_b,
                      preferred_element_type=jnp.float32)
        # Gate math strictly fp32 (v5e has no bf16 VPU/EUP).
        r_f = jax.nn.sigmoid(gxf[:, :H] + ghf[:, :H])
        z_f = jax.nn.sigmoid(gxf[:, H:2 * H] + ghf[:, H:2 * H])
        n_f = jnp.tanh(gxf[:, 2 * H:] + r_f * (ghf[:, 2 * H:] + bhn_f))
        h_f = (1.0 - z_f) * n_f + z_f * h_f
        r_b = jax.nn.sigmoid(gxb[:, :H] + ghb[:, :H])
        z_b = jax.nn.sigmoid(gxb[:, H:2 * H] + ghb[:, H:2 * H])
        n_b = jnp.tanh(gxb[:, 2 * H:] + r_b * (ghb[:, 2 * H:] + bhn_b))
        h_b = (1.0 - z_b) * n_b + z_b * h_b
    hf_ref[...] = h_f
    hb_ref[...] = h_b

    # torch.max over the 2 directions of the final hidden state (num_lyr == 1)
    @pl.when(t == pl.num_programs(0) - 1)
    def _emit():
        out_ref[...] = jnp.maximum(h_f, h_b)


# ------------------------- Weight layout fusion ------------------------------
def fuse_gru_params(w_ih, w_hh, b_ih, b_hh, H):
    """One-time re-layout of per-direction GRU params for the fused kernel.

    Inputs (PyTorch gate order [r|z|n], pre-transposed so x @ w works):
      w_ih: (2, D_in, 3H)   w_hh: (2, H, 3H)   b_ih/b_hh: (2, 1, 3H)
    Returns:
      w_ih bf16 (2, D, 3H), w_hh bf16 (2, H, 3H),
      bx  f32 (2, 1, 3H) : b_ih with b_hh folded in for the r/z gates,
      bhn f32 (2, 1, H)  : n-gate recurrent bias (applied inside r*(gh_n+b_hn)).
    """
    bx = b_ih.at[:, :, :2 * H].add(b_hh[:, :, :2 * H]).astype(jnp.float32)
    bhn = b_hh[:, :, 2 * H:].astype(jnp.float32)
    return (w_ih.astype(jnp.bfloat16), w_hh.astype(jnp.bfloat16), bx, bhn)


# ------------------------------ Wrapper --------------------------------------
def utterance_encoder_forward(inp_voc, inp_kb, params, *, t_chunk=8):
    """Mirrors UtteranceEncoder.forward (inference, bidi=True, num_lyr=1).

    inp_voc: (B, T) int32 token ids
    inp_kb : (B, T, kb_embed_size) float32
    returns: (B, 1, H) float32
    """
    embed_w = params["embed_vocab"]             # (vocab, emb_size), row 3 = 0
    w_ih = params["w_ih"]                       # (2, D, 3H) bf16
    w_hh = params["w_hh"]                       # (2, H, 3H) bf16
    bx = params["bx"]                           # (2, 1, 3H) f32
    bhn = params["bhn"]                         # (2, 1, H)  f32
    H = params["hid_size"]

    B, T = inp_voc.shape
    # glue: embedding gather + concat, built directly TIME-MAJOR (no standalone
    # batch-major materialization).  Dropout: identity at inference (drp=0).
    token_emb = embed_w[inp_voc.T]                                # (T, B, E)
    emb_tm = jnp.concatenate(
        [token_emb, jnp.transpose(inp_kb, (1, 0, 2)).astype(token_emb.dtype)],
        axis=2)                                                   # (T, B, D)
    D = emb_tm.shape[2]
    # bf16 MXU operand; flatten to (T*B, D) so each chunk is a clean 2-D slab.
    emb_flat = emb_tm.reshape(T * B, D).astype(jnp.bfloat16)

    # Chunking: largest divisor of T <= t_chunk (keeps reversal exact).
    Tc = max(1, min(t_chunk, T))
    while T % Tc:
        Tc -= 1
    num_chunks = T // Tc

    # VMEM budget: double-buffered fwd+bwd emb chunks + resident weights/biases
    # + carries/out, with headroom.  Kept well under v7x's 64 MiB.
    vmem_bytes = (2 * 2 * Tc * B * D * 2
                  + (2 * D * 3 * H + 2 * H * 3 * H) * 2
                  + (2 * 3 * H + 2 * H) * 4
                  + 3 * B * H * 4)
    vmem_limit = int(min(96 << 20, max(16 << 20, 2 * vmem_bytes)))

    flops = 2 * 2 * T * B * D * 3 * H + 2 * 2 * T * B * H * 3 * H
    transcendentals = 2 * 3 * T * B * H
    bytes_accessed = (2 * T * B * D * 2
                      + (2 * D * 3 * H + 2 * H * 3 * H) * 2
                      + (2 * 3 * H + 2 * H) * 4 + B * H * 4)

    # TODO(synk): for large B on v7x, add a leading "parallel" batch grid axis
    # (block B across the 2 TensorCores); at B=2 it would only shrink the MXU M.
    # TODO(synk): num_lyr > 1 stacked GRU layers not implemented (module uses 1).
    gru_hid = pl.pallas_call(
        gru_bidi_chunk_kernel,
        out_shape=jax.ShapeDtypeStruct((B, H), jnp.float32),
        grid_spec=pltpu.PrefetchScalarGridSpec(
            num_scalar_prefetch=0,
            grid=(num_chunks,),
            in_specs=[
                # forward chunk t
                pl.BlockSpec((Tc * B, D), lambda t: (t, 0)),
                # backward chunk: time reversal via the index_map
                pl.BlockSpec((Tc * B, D),
                             lambda t, n=num_chunks: (n - 1 - t, 0)),
                # weights / biases: constant index -> stay resident in VMEM
                pl.BlockSpec((2, D, 3 * H), lambda t: (0, 0, 0)),
                pl.BlockSpec((2, H, 3 * H), lambda t: (0, 0, 0)),
                pl.BlockSpec((2, 1, 3 * H), lambda t: (0, 0, 0)),
                pl.BlockSpec((2, 1, H), lambda t: (0, 0, 0)),
            ],
            out_specs=pl.BlockSpec((B, H), lambda t: (0, 0)),
            scratch_shapes=[pltpu.VMEM((B, H), jnp.float32),   # h_fwd carry
                            pltpu.VMEM((B, H), jnp.float32)],  # h_bwd carry
        ),
        compiler_params=pltpu.CompilerParams(
            dimension_semantics=("arbitrary",),
            vmem_limit_bytes=vmem_limit),
        cost_estimate=pl.CostEstimate(flops=flops,
                                      transcendentals=transcendentals,
                                      bytes_accessed=bytes_accessed),
    )(emb_flat, emb_flat, w_ih, w_hh, bx, bhn)

    # gru_hid[last_layer].unsqueeze(0).transpose(0, 1) -> (B, 1, H)
    return gru_hid[:, None, :]


# --------------------------- Pure-JAX reference -------------------------------
def _gru_bidi_ref(emb, w_ih, w_hh, b_ih, b_hh, H):
    """emb: (B, T, D) f32. Returns (B, H) = max over directions of final h."""
    def cell(h, x_t, d):
        gx = x_t @ w_ih[d] + b_ih[d, 0]
        gh = h @ w_hh[d] + b_hh[d, 0]
        r = jax.nn.sigmoid(gx[:, :H] + gh[:, :H])
        z = jax.nn.sigmoid(gx[:, H:2 * H] + gh[:, H:2 * H])
        n = jnp.tanh(gx[:, 2 * H:] + r * gh[:, 2 * H:])
        return (1.0 - z) * n + z * h

    B, T, _ = emb.shape
    h0 = jnp.zeros((B, H), jnp.float32)
    emb_tm = jnp.transpose(emb, (1, 0, 2))
    h_fwd, _ = lax.scan(lambda h, x: (cell(h, x, 0), None), h0, emb_tm)
    h_bwd, _ = lax.scan(lambda h, x: (cell(h, x, 1), None), h0, emb_tm[::-1])
    return jnp.maximum(h_fwd, h_bwd)


# ------------------------------- Main ----------------------------------------
if __name__ == "__main__":
    # options (small, consistent with the module): bidi=True, num_lyr=1, drp=0
    B, T = 2, 8
    vocab_size, emb_size, kb_embed_size, hid_size = 32, 16, 16, 32
    D_in = emb_size + kb_embed_size
    H = hid_size

    key = jax.random.PRNGKey(0)
    k = jax.random.split(key, 8)
    bound = 1.0 / jnp.sqrt(H)

    embed_vocab = jax.random.normal(k[0], (vocab_size, emb_size), jnp.float32) * 0.1
    embed_vocab = embed_vocab.at[3].set(0.0)  # padding_idx=3

    # raw per-direction GRU params (PyTorch layout, pre-transposed for x @ w)
    w_ih = jax.random.uniform(k[1], (2, D_in, 3 * H), jnp.float32, -bound, bound)
    w_hh = jax.random.uniform(k[2], (2, H, 3 * H), jnp.float32, -bound, bound)
    b_ih = jax.random.uniform(k[3], (2, 1, 3 * H), jnp.float32, -bound, bound)
    b_hh = jax.random.uniform(k[4], (2, 1, 3 * H), jnp.float32, -bound, bound)

    # one-time weight re-layout (bf16 MXU operands, r/z recurrent bias folded)
    w_ih_k, w_hh_k, bx_k, bhn_k = fuse_gru_params(w_ih, w_hh, b_ih, b_hh, H)
    params = dict(embed_vocab=embed_vocab, w_ih=w_ih_k, w_hh=w_hh_k,
                  bx=bx_k, bhn=bhn_k, hid_size=H)

    inp_voc = jax.random.randint(k[5], (B, T), 0, vocab_size, jnp.int32)
    inp_kb = jax.random.normal(k[6], (B, T, kb_embed_size), jnp.float32)

    # t_chunk=4 -> grid=(2,): exercises the multi-chunk VMEM carry path.
    out = utterance_encoder_forward(inp_voc, inp_kb, params, t_chunk=4)
    out = jax.block_until_ready(out)
    assert out.shape == (B, 1, H), out.shape

    # correctness vs a pure-fp32 bidirectional GRU reference; tolerance is
    # re-baselined for bf16 MXU operands (fp32 accumulation + fp32 gate math).
    token_emb = embed_vocab[inp_voc]
    emb = jnp.concatenate([token_emb, inp_kb], axis=2)
    ref = _gru_bidi_ref(emb, w_ih, w_hh, b_ih, b_hh, H)[:, None, :]
    err = float(jnp.abs(out - ref).max())
    assert jnp.allclose(out, ref, atol=5e-2, rtol=5e-2), err

    print("KERNEL_OK")
</pallas_src>

<mosaic_0001>
module attributes {stable_mosaic.version = 11 : i64} {
  func.func @gru_bidi_chunk_kernel(%arg0: i32, %arg1: memref<8x32xbf16, #tpu.memory_space<vmem>>, %arg2: memref<8x32xbf16, #tpu.memory_space<vmem>>, %arg3: memref<2x32x96xbf16, #tpu.memory_space<vmem>>, %arg4: memref<2x32x96xbf16, #tpu.memory_space<vmem>>, %arg5: memref<2x1x96xf32, #tpu.memory_space<vmem>>, %arg6: memref<2x1x32xf32, #tpu.memory_space<vmem>>, %arg7: memref<2x32xf32, #tpu.memory_space<vmem>>, %arg8: memref<2x32xf32, #tpu.memory_space<vmem>>, %arg9: memref<2x32xf32, #tpu.memory_space<vmem>>) attributes {dimension_semantics = [#tpu.dimension_semantics<arbitrary>], iteration_bounds = array<i64: 2>, scalar_prefetch = 0 : i64, scratch_operands = 2 : i64, tpu.core_type = #tpu.core_type<tc>, window_params = [{transform_indices = @transform_0, window_bounds = array<i64: 8, 32>}, {transform_indices = @transform_1, window_bounds = array<i64: 8, 32>}, {pipeline_mode = #tpu.pipeline_mode<synchronous>, transform_indices = @transform_2, window_bounds = array<i64: 2, 32, 96>}, {pipeline_mode = #tpu.pipeline_mode<synchronous>, transform_indices = @transform_3, window_bounds = array<i64: 2, 32, 96>}, {pipeline_mode = #tpu.pipeline_mode<synchronous>, transform_indices = @transform_4, window_bounds = array<i64: 2, 1, 96>}, {pipeline_mode = #tpu.pipeline_mode<synchronous>, transform_indices = @transform_5, window_bounds = array<i64: 2, 1, 32>}, {pipeline_mode = #tpu.pipeline_mode<synchronous>, transform_indices = @transform_6, window_bounds = array<i64: 2, 32>}]} {
    %c0_i32 = arith.constant 0 : i32
    %0 = arith.cmpi eq, %arg0, %c0_i32 : i32
    %1 = arith.extui %0 : i1 to i32
    %c0_i32_0 = arith.constant 0 : i32
    %2 = arith.cmpi ne, %1, %c0_i32_0 : i32
    scf.if %2 {
      %cst_69 = arith.constant 0.000000e+00 : f32
      %278 = vector.broadcast %cst_69 : f32 to vector<2x32xf32>
      %c0_70 = arith.constant 0 : index
      %c0_71 = arith.constant 0 : index
      %279 = vector.load %arg8[%c0_70, %c0_71] : memref<2x32xf32, #tpu.memory_space<vmem>>, vector<2x32xf32>
      tpu.vector_store %arg8[%c0_70, %c0_71], %278 {strides = array<i32>} : memref<2x32xf32, #tpu.memory_space<vmem>>, vector<2x32xf32>,
      %cst_72 = arith.constant 0.000000e+00 : f32
      %280 = vector.broadcast %cst_72 : f32 to vector<2x32xf32>
      %c0_73 = arith.constant 0 : index
      %c0_74 = arith.constant 0 : index
      %281 = vector.load %arg9[%c0_73, %c0_74] : memref<2x32xf32, #tpu.memory_space<vmem>>, vector<2x32xf32>
      tpu.vector_store %arg9[%c0_73, %c0_74], %280 {strides = array<i32>} : memref<2x32xf32, #tpu.memory_space<vmem>>, vector<2x32xf32>,
    } else {
    }
    %c0 = arith.constant 0 : index
    %c0_1 = arith.constant 0 : index
    %3 = vector.load %arg1[%c0, %c0_1] : memref<8x32xbf16, #tpu.memory_space<vmem>>, vector<8x32xbf16>
    %c0_2 = arith.constant 0 : index
    %c0_3 = arith.constant 0 : index
    %c0_4 = arith.constant 0 : index
    %4 = vector.load %arg3[%c0_2, %c0_3, %c0_4] : memref<2x32x96xbf16, #tpu.memory_space<vmem>>, vector<1x32x96xbf16>
    %5 = vector.shape_cast %4 : vector<1x32x96xbf16> to vector<32x96xbf16>
    %cst = arith.constant dense<0.000000e+00> : vector<8x96xf32>
    %6 = tpu.matmul %3, %5, %cst {dimension_numbers = #tpu.dot_dimension_numbers<[1], [0], [0], [1], [0, 0, 1, 1], [], []>} : vector<8x32xbf16>, vector<32x96xbf16>, vector<8x96xf32> -> vector<8x96xf32>
    %c0_5 = arith.constant 0 : index
    %c0_6 = arith.constant 0 : index
    %c0_7 = arith.constant 0 : index
    %7 = vector.load %arg5[%c0_5, %c0_6, %c0_7] : memref<2x1x96xf32, #tpu.memory_space<vmem>>, vector<1x1x96xf32>
    %8 = vector.shape_cast %7 : vector<1x1x96xf32> to vector<1x96xf32>
    %9 = vector.broadcast %8 : vector<1x96xf32> to vector<8x96xf32>
    %10 = arith.addf %6, %9 : vector<8x96xf32>
    %c0_8 = arith.constant 0 : index
    %c0_9 = arith.constant 0 : index
    %11 = vector.load %arg2[%c0_8, %c0_9] : memref<8x32xbf16, #tpu.memory_space<vmem>>, vector<8x32xbf16>
    %c1 = arith.constant 1 : index
    %c0_10 = arith.constant 0 : index
    %c0_11 = arith.constant 0 : index
    %12 = vector.load %arg3[%c1, %c0_10, %c0_11] : memref<2x32x96xbf16, #tpu.memory_space<vmem>>, vector<1x32x96xbf16>
    %13 = vector.shape_cast %12 : vector<1x32x96xbf16> to vector<32x96xbf16>
    %cst_12 = arith.constant dense<0.000000e+00> : vector<8x96xf32>
    %14 = tpu.matmul %11, %13, %cst_12 {dimension_numbers = #tpu.dot_dimension_numbers<[1], [0], [0], [1], [0, 0, 1, 1], [], []>} : vector<8x32xbf16>, vector<32x96xbf16>, vector<8x96xf32> -> vector<8x96xf32>
    %c1_13 = arith.constant 1 : index
    %c0_14 = arith.constant 0 : index
    %c0_15 = arith.constant 0 : index
    %15 = vector.load %arg5[%c1_13, %c0_14, %c0_15] : memref<2x1x96xf32, #tpu.memory_space<vmem>>, vector<1x1x96xf32>
    %16 = vector.shape_cast %15 : vector<1x1x96xf32> to vector<1x96xf32>
    %17 = vector.broadcast %16 : vector<1x96xf32> to vector<8x96xf32>
    %18 = arith.addf %14, %17 : vector<8x96xf32>
    %c0_16 = arith.constant 0 : index
    %c0_17 = arith.constant 0 : index
    %c0_18 = arith.constant 0 : index
    %19 = vector.load %arg4[%c0_16, %c0_17, %c0_18] : memref<2x32x96xbf16, #tpu.memory_space<vmem>>, vector<1x32x96xbf16>
    %20 = vector.shape_cast %19 : vector<1x32x96xbf16> to vector<32x96xbf16>
    %c1_19 = arith.constant 1 : index
    %c0_20 = arith.constant 0 : index
    %c0_21 = arith.constant 0 : index
    %21 = vector.load %arg4[%c1_19, %c0_20, %c0_21] : memref<2x32x96xbf16, #tpu.memory_space<vmem>>, vector<1x32x96xbf16>
    %22 = vector.shape_cast %21 : vector<1x32x96xbf16> to vector<32x96xbf16>
    %c0_22 = arith.constant 0 : index
    %c0_23 = arith.constant 0 : index
    %c0_24 = arith.constant 0 : index
    %23 = vector.load %arg6[%c0_22, %c0_23, %c0_24] : memref<2x1x32xf32, #tpu.memory_space<vmem>>, vector<1x1x32xf32>
    %24 = vector.shape_cast %23 : vector<1x1x32xf32> to vector<1x32xf32>
    %25 = vector.shape_cast %24 : vector<1x32xf32> to vector<1x32xf32>
    %26 = vector.broadcast %25 : vector<1x32xf32> to vector<2x32xf32>
    %c1_25 = arith.constant 1 : index
    %c0_26 = arith.constant 0 : index
    %c0_27 = arith.constant 0 : index
    %27 = vector.load %arg6[%c1_25, %c0_26, %c0_27] : memref<2x1x32xf32, #tpu.memory_space<vmem>>, vector<1x1x32xf32>
    %28 = vector.shape_cast %27 : vector<1x1x32xf32> to vector<1x32xf32>
    %29 = vector.shape_cast %28 : vector<1x32xf32> to vector<1x32xf32>
    %30 = vector.broadcast %29 : vector<1x32xf32> to vector<2x32xf32>
    %c0_28 = arith.constant 0 : index
    %c0_29 = arith.constant 0 : index
    %31 = vector.load %arg8[%c0_28, %c0_29] : memref<2x32xf32, #tpu.memory_space<vmem>>, vector<2x32xf32>
    %c0_30 = arith.constant 0 : index
    %c0_31 = arith.constant 0 : index
    %32 = vector.load %arg9[%c0_30, %c0_31] : memref<2x32xf32, #tpu.memory_space<vmem>>, vector<2x32xf32>
    %33 = vector.extract_strided_slice %10 {offsets = [0, 0], sizes = [2, 96], strides = [1, 1]} : vector<8x96xf32> to vector<2x96xf32>
    %34 = vector.extract_strided_slice %18 {offsets = [6, 0], sizes = [2, 96], strides = [1, 1]} : vector<8x96xf32> to vector<2x96xf32>
    %35 = arith.truncf %31 : vector<2x32xf32> to vector<2x32xbf16>
    %cst_32 = arith.constant dense<0.000000e+00> : vector<2x96xf32>
    %36 = tpu.matmul %35, %20, %cst_32 {dimension_numbers = #tpu.dot_dimension_numbers<[1], [0], [0], [1], [0, 0, 1, 1], [], []>} : vector<2x32xbf16>, vector<32x96xbf16>, vector<2x96xf32> -> vector<2x96xf32>
    %37 = arith.truncf %32 : vector<2x32xf32> to vector<2x32xbf16>
    %cst_33 = arith.constant dense<0.000000e+00> : vector<2x96xf32>
    %38 = tpu.matmul %37, %22, %cst_33 {dimension_numbers = #tpu.dot_dimension_numbers<[1], [0], [0], [1], [0, 0, 1, 1], [], []>} : vector<2x32xbf16>, vector<32x96xbf16>, vector<2x96xf32> -> vector<2x96xf32>
    %39 = vector.extract_strided_slice %33 {offsets = [0, 0], sizes = [2, 32], strides = [1, 1]} : vector<2x96xf32> to vector<2x32xf32>
    %40 = vector.extract_strided_slice %36 {offsets = [0, 0], sizes = [2, 32], strides = [1, 1]} : vector<2x96xf32> to vector<2x32xf32>
    %41 = arith.addf %39, %40 : vector<2x32xf32>
    %42 = arith.negf %41 : vector<2x32xf32>
    %43 = math.exp %42 : vector<2x32xf32>
    %cst_34 = arith.constant 1.000000e+00 : f32
    %44 = vector.broadcast %cst_34 : f32 to vector<2x32xf32>
    %45 = arith.addf %44, %43 : vector<2x32xf32>
    %46 = arith.divf %44, %45 : vector<2x32xf32>
    %47 = vector.extract_strided_slice %33 {offsets = [0, 32], sizes = [2, 32], strides = [1, 1]} : vector<2x96xf32> to vector<2x32xf32>
    %48 = vector.extract_strided_slice %36 {offsets = [0, 32], sizes = [2, 32], strides = [1, 1]} : vector<2x96xf32> to vector<2x32xf32>
    %49 = arith.addf %47, %48 : vector<2x32xf32>
    %50 = arith.negf %49 : vector<2x32xf32>
    %51 = math.exp %50 : vector<2x32xf32>
    %cst_35 = arith.constant 1.000000e+00 : f32
    %52 = vector.broadcast %cst_35 : f32 to vector<2x32xf32>
    %53 = arith.addf %52, %51 : vector<2x32xf32>
    %54 = arith.divf %52, %53 : vector<2x32xf32>
    %55 = vector.extract_strided_slice %33 {offsets = [0, 64], sizes = [2, 32], strides = [1, 1]} : vector<2x96xf32> to vector<2x32xf32>
    %56 = vector.extract_strided_slice %36 {offsets = [0, 64], sizes = [2, 32], strides = [1, 1]} : vector<2x96xf32> to vector<2x32xf32>
    %57 = arith.addf %56, %26 : vector<2x32xf32>
    %58 = arith.mulf %46, %57 : vector<2x32xf32>
    %59 = arith.addf %55, %58 : vector<2x32xf32>
    %60 = math.tanh %59 : vector<2x32xf32>
    %cst_36 = arith.constant 1.000000e+00 : f32
    %61 = vector.broadcast %cst_36 : f32 to vector<2x32xf32>
    %62 = arith.subf %61, %54 : vector<2x32xf32>
    %63 = arith.mulf %62, %60 : vector<2x32xf32>
    %64 = arith.mulf %54, %31 : vector<2x32xf32>
    %65 = arith.addf %63, %64 : vector<2x32xf32>
    %66 = vector.extract_strided_slice %34 {offsets = [0, 0], sizes = [2, 32], strides = [1, 1]} : vector<2x96xf32> to vector<2x32xf32>
    %67 = vector.extract_strided_slice %38 {offsets = [0, 0], sizes = [2, 32], strides = [1, 1]} : vector<2x96xf32> to vector<2x32xf32>
    %68 = arith.addf %66, %67 : vector<2x32xf32>
    %69 = arith.negf %68 : vector<2x32xf32>
    %70 = math.exp %69 : vector<2x32xf32>
    %cst_37 = arith.constant 1.000000e+00 : f32
    %71 = vector.broadcast %cst_37 : f32 to vector<2x32xf32>
    %72 = arith.addf %71, %70 : vector<2x32xf32>
    %73 = arith.divf %71, %72 : vector<2x32xf32>
    %74 = vector.extract_strided_slice %34 {offsets = [0, 32], sizes = [2, 32], strides = [1, 1]} : vector<2x96xf32> to vector<2x32xf32>
    %75 = vector.extract_strided_slice %38 {offsets = [0, 32], sizes = [2, 32], strides = [1, 1]} : vector<2x96xf32> to vector<2x32xf32>
    %76 = arith.addf %74, %75 : vector<2x32xf32>
    %77 = arith.negf %76 : vector<2x32xf32>
    %78 = math.exp %77 : vector<2x32xf32>
    %cst_38 = arith.constant 1.000000e+00 : f32
    %79 = vector.broadcast %cst_38 : f32 to vector<2x32xf32>
    %80 = arith.addf %79, %78 : vector<2x32xf32>
    %81 = arith.divf %79, %80 : vector<2x32xf32>
    %82 = vector.extract_strided_slice %34 {offsets = [0, 64], sizes = [2, 32], strides = [1, 1]} : vector<2x96xf32> to vector<2x32xf32>
    %83 = vector.extract_strided_slice %38 {offsets = [0, 64], sizes = [2, 32], strides = [1, 1]} : vector<2x96xf32> to vector<2x32xf32>
    %84 = arith.addf %83, %30 : vector<2x32xf32>
    %85 = arith.mulf %73, %84 : vector<2x32xf32>
    %86 = arith.addf %82, %85 : vector<2x32xf32>
    %87 = math.tanh %86 : vector<2x32xf32>
    %cst_39 = arith.constant 1.000000e+00 : f32
    %88 = vector.broadcast %cst_39 : f32 to vector<2x32xf32>
    %89 = arith.subf %88, %81 : vector<2x32xf32>
    %90 = arith.mulf %89, %87 : vector<2x32xf32>
    %91 = arith.mulf %81, %32 : vector<2x32xf32>
    %92 = arith.addf %90, %91 : vector<2x32xf32>
    %93 = vector.extract_strided_slice %10 {offsets = [2, 0], sizes = [2, 96], strides = [1, 1]} : vector<8x96xf32> to vector<2x96xf32>
    %94 = vector.extract_strided_slice %18 {offsets = [4, 0], sizes = [2, 96], strides = [1, 1]} : vector<8x96xf32> to vector<2x96xf32>
    %95 = arith.truncf %65 : vector<2x32xf32> to vector<2x32xbf16>
    %cst_40 = arith.constant dense<0.000000e+00> : vector<2x96xf32>
    %96 = tpu.matmul %95, %20, %cst_40 {dimension_numbers = #tpu.dot_dimension_numbers<[1], [0], [0], [1], [0, 0, 1, 1], [], []>} : vector<2x32xbf16>, vector<32x96xbf16>, vector<2x96xf32> -> vector<2x96xf32>
    %97 = arith.truncf %92 : vector<2x32xf32> to vector<2x32xbf16>
    %cst_41 = arith.constant dense<0.000000e+00> : vector<2x96xf32>
    %98 = tpu.matmul %97, %22, %cst_41 {dimension_numbers = #tpu.dot_dimension_numbers<[1], [0], [0], [1], [0, 0, 1, 1], [], []>} : vector<2x32xbf16>, vector<32x96xbf16>, vector<2x96xf32> -> vector<2x96xf32>
    %99 = vector.extract_strided_slice %93 {offsets = [0, 0], sizes = [2, 32], strides = [1, 1]} : vector<2x96xf32> to vector<2x32xf32>
    %100 = vector.extract_strided_slice %96 {offsets = [0, 0], sizes = [2, 32], strides = [1, 1]} : vector<2x96xf32> to vector<2x32xf32>
    %101 = arith.addf %99, %100 : vector<2x32xf32>
    %102 = arith.negf %101 : vector<2x32xf32>
    %103 = math.exp %102 : vector<2x32xf32>
    %cst_42 = arith.constant 1.000000e+00 : f32
    %104 = vector.broadcast %cst_42 : f32 to vector<2x32xf32>
    %105 = arith.addf %104, %103 : vector<2x32xf32>
    %106 = arith.divf %104, %105 : vector<2x32xf32>
    %107 = vector.extract_strided_slice %93 {offsets = [0, 32], sizes = [2, 32], strides = [1, 1]} : vector<2x96xf32> to vector<2x32xf32>
    %108 = vector.extract_strided_slice %96 {offsets = [0, 32], sizes = [2, 32], strides = [1, 1]} : vector<2x96xf32> to vector<2x32xf32>
    %109 = arith.addf %107, %108 : vector<2x32xf32>
    %110 = arith.negf %109 : vector<2x32xf32>
    %111 = math.exp %110 : vector<2x32xf32>
    %cst_43 = arith.constant 1.000000e+00 : f32
    %112 = vector.broadcast %cst_43 : f32 to vector<2x32xf32>
    %113 = arith.addf %112, %111 : vector<2x32xf32>
    %114 = arith.divf %112, %113 : vector<2x32xf32>
    %115 = vector.extract_strided_slice %93 {offsets = [0, 64], sizes = [2, 32], strides = [1, 1]} : vector<2x96xf32> to vector<2x32xf32>
    %116 = vector.extract_strided_slice %96 {offsets = [0, 64], sizes = [2, 32], strides = [1, 1]} : vector<2x96xf32> to vector<2x32xf32>
    %117 = arith.addf %116, %26 : vector<2x32xf32>
    %118 = arith.mulf %106, %117 : vector<2x32xf32>
    %119 = arith.addf %115, %118 : vector<2x32xf32>
    %120 = math.tanh %119 : vector<2x32xf32>
    %cst_44 = arith.constant 1.000000e+00 : f32
    %121 = vector.broadcast %cst_44 : f32 to vector<2x32xf32>
    %122 = arith.subf %121, %114 : vector<2x32xf32>
    %123 = arith.mulf %122, %120 : vector<2x32xf32>
    %124 = arith.mulf %114, %65 : vector<2x32xf32>
    %125 = arith.addf %123, %124 : vector<2x32xf32>
    %126 = vector.extract_strided_slice %94 {offsets = [0, 0], sizes = [2, 32], strides = [1, 1]} : vector<2x96xf32> to vector<2x32xf32>
    %127 = vector.extract_strided_slice %98 {offsets = [0, 0], sizes = [2, 32], strides = [1, 1]} : vector<2x96xf32> to vector<2x32xf32>
    %128 = arith.addf %126, %127 : vector<2x32xf32>
    %129 = arith.negf %128 : vector<2x32xf32>
    %130 = math.exp %129 : vector<2x32xf32>
    %cst_45 = arith.constant 1.000000e+00 : f32
    %131 = vector.broadcast %cst_45 : f32 to vector<2x32xf32>
    %132 = arith.addf %131, %130 : vector<2x32xf32>
    %133 = arith.divf %131, %132 : vector<2x32xf32>
    %134 = vector.extract_strided_slice %94 {offsets = [0, 32], sizes = [2, 32], strides = [1, 1]} : vector<2x96xf32> to vector<2x32xf32>
    %135 = vector.extract_strided_slice %98 {offsets = [0, 32], sizes = [2, 32], strides = [1, 1]} : vector<2x96xf32> to vector<2x32xf32>
    %136 = arith.addf %134, %135 : vector<2x32xf32>
    %137 = arith.negf %136 : vector<2x32xf32>
    %138 = math.exp %137 : vector<2x32xf32>
    %cst_46 = arith.constant 1.000000e+00 : f32
    %139 = vector.broadcast %cst_46 : f32 to vector<2x32xf32>
    %140 = arith.addf %139, %138 : vector<2x32xf32>
    %141 = arith.divf %139, %140 : vector<2x32xf32>
    %142 = vector.extract_strided_slice %94 {offsets = [0, 64], sizes = [2, 32], strides = [1, 1]} : vector<2x96xf32> to vector<2x32xf32>
    %143 = vector.extract_strided_slice %98 {offsets = [0, 64], sizes = [2, 32], strides = [1, 1]} : vector<2x96xf32> to vector<2x32xf32>
    %144 = arith.addf %143, %30 : vector<2x32xf32>
    %145 = arith.mulf %133, %144 : vector<2x32xf32>
    %146 = arith.addf %142, %145 : vector<2x32xf32>
    %147 = math.tanh %146 : vector<2x32xf32>
    %cst_47 = arith.constant 1.000000e+00 : f32
    %148 = vector.broadcast %cst_47 : f32 to vector<2x32xf32>
    %149 = arith.subf %148, %141 : vector<2x32xf32>
    %150 = arith.mulf %149, %147 : vector<2x32xf32>
    %151 = arith.mulf %141, %92 : vector<2x32xf32>
    %152 = arith.addf %150, %151 : vector<2x32xf32>
    %153 = vector.extract_strided_slice %10 {offsets = [4, 0], sizes = [2, 96], strides = [1, 1]} : vector<8x96xf32> to vector<2x96xf32>
    %154 = vector.extract_strided_slice %18 {offsets = [2, 0], sizes = [2, 96], strides = [1, 1]} : vector<8x96xf32> to vector<2x96xf32>
    %155 = arith.truncf %125 : vector<2x32xf32> to vector<2x32xbf16>
    %cst_48 = arith.constant dense<0.000000e+00> : vector<2x96xf32>
    %156 = tpu.matmul %155, %20, %cst_48 {dimension_numbers = #tpu.dot_dimension_numbers<[1], [0], [0], [1], [0, 0, 1, 1], [], []>} : vector<2x32xbf16>, vector<32x96xbf16>, vector<2x96xf32> -> vector<2x96xf32>
    %157 = arith.truncf %152 : vector<2x32xf32> to vector<2x32xbf16>
    %cst_49 = arith.constant dense<0.000000e+00> : vector<2x96xf32>
    %158 = tpu.matmul %157, %22, %cst_49 {dimension_numbers = #tpu.dot_dimension_numbers<[1], [0], [0], [1], [0, 0, 1, 1], [], []>} : vector<2x32xbf16>, vector<32x96xbf16>, vector<2x96xf32> -> vector<2x96xf32>
    %159 = vector.extract_strided_slice %153 {offsets = [0, 0], sizes = [2, 32], strides = [1, 1]} : vector<2x96xf32> to vector<2x32xf32>
    %160 = vector.extract_strided_slice %156 {offsets = [0, 0], sizes = [2, 32], strides = [1, 1]} : vector<2x96xf32> to vector<2x32xf32>
    %161 = arith.addf %159, %160 : vector<2x32xf32>
    %162 = arith.negf %161 : vector<2x32xf32>
    %163 = math.exp %162 : vector<2x32xf32>
    %cst_50 = arith.constant 1.000000e+00 : f32
    %164 = vector.broadcast %cst_50 : f32 to vector<2x32xf32>
    %165 = arith.addf %164, %163 : vector<2x32xf32>
    %166 = arith.divf %164, %165 : vector<2x32xf32>
    %167 = vector.extract_strided_slice %153 {offsets = [0, 32], sizes = [2, 32], strides = [1, 1]} : vector<2x96xf32> to vector<2x32xf32>
    %168 = vector.extract_strided_slice %156 {offsets = [0, 32], sizes = [2, 32], strides = [1, 1]} : vector<2x96xf32> to vector<2x32xf32>
    %169 = arith.addf %167, %168 : vector<2x32xf32>
    %170 = arith.negf %169 : vector<2x32xf32>
    %171 = math.exp %170 : vector<2x32xf32>
    %cst_51 = arith.constant 1.000000e+00 : f32
    %172 = vector.broadcast %cst_51 : f32 to vector<2x32xf32>
    %173 = arith.addf %172, %171 : vector<2x32xf32>
    %174 = arith.divf %172, %173 : vector<2x32xf32>
    %175 = vector.extract_strided_slice %153 {offsets = [0, 64], sizes = [2, 32], strides = [1, 1]} : vector<2x96xf32> to vector<2x32xf32>
    %176 = vector.extract_strided_slice %156 {offsets = [0, 64], sizes = [2, 32], strides = [1, 1]} : vector<2x96xf32> to vector<2x32xf32>
    %177 = arith.addf %176, %26 : vector<2x32xf32>
    %178 = arith.mulf %166, %177 : vector<2x32xf32>
    %179 = arith.addf %175, %178 : vector<2x32xf32>
    %180 = math.tanh %179 : vector<2x32xf32>
    %cst_52 = arith.constant 1.000000e+00 : f32
    %181 = vector.broadcast %cst_52 : f32 to vector<2x32xf32>
    %182 = arith.subf %181, %174 : vector<2x32xf32>
    %183 = arith.mulf %182, %180 : vector<2x32xf32>
    %184 = arith.mulf %174, %125 : vector<2x32xf32>
    %185 = arith.addf %183, %184 : vector<2x32xf32>
    %186 = vector.extract_strided_slice %154 {offsets = [0, 0], sizes = [2, 32], strides = [1, 1]} : vector<2x96xf32> to vector<2x32xf32>
    %187 = vector.extract_strided_slice %158 {offsets = [0, 0], sizes = [2, 32], strides = [1, 1]} : vector<2x96xf32> to vector<2x32xf32>
    %188 = arith.addf %186, %187 : vector<2x32xf32>
    %189 = arith.negf %188 : vector<2x32xf32>
    %190 = math.exp %189 : vector<2x32xf32>
    %cst_53 = arith.constant 1.000000e+00 : f32
    %191 = vector.broadcast %cst_53 : f32 to vector<2x32xf32>
    %192 = arith.addf %191, %190 : vector<2x32xf32>
    %193 = arith.divf %191, %192 : vector<2x32xf32>
    %194 = vector.extract_strided_slice %154 {offsets = [0, 32], sizes = [2, 32], strides = [1, 1]} : vector<2x96xf32> to vector<2x32xf32>
    %195 = vector.extract_strided_slice %158 {offsets = [0, 32], sizes = [2, 32], strides = [1, 1]} : vector<2x96xf32> to vector<2x32xf32>
    %196 = arith.addf %194, %195 : vector<2x32xf32>
    %197 = arith.negf %196 : vector<2x32xf32>
    %198 = math.exp %197 : vector<2x32xf32>
    %cst_54 = arith.constant 1.000000e+00 : f32
    %199 = vector.broadcast %cst_54 : f32 to vector<2x32xf32>
    %200 = arith.addf %199, %198 : vector<2x32xf32>
    %201 = arith.divf %199, %200 : vector<2x32xf32>
    %202 = vector.extract_strided_slice %154 {offsets = [0, 64], sizes = [2, 32], strides = [1, 1]} : vector<2x96xf32> to vector<2x32xf32>
    %203 = vector.extract_strided_slice %158 {offsets = [0, 64], sizes = [2, 32], strides = [1, 1]} : vector<2x96xf32> to vector<2x32xf32>
    %204 = arith.addf %203, %30 : vector<2x32xf32>
    %205 = arith.mulf %193, %204 : vector<2x32xf32>
    %206 = arith.addf %202, %205 : vector<2x32xf32>
    %207 = math.tanh %206 : vector<2x32xf32>
    %cst_55 = arith.constant 1.000000e+00 : f32
    %208 = vector.broadcast %cst_55 : f32 to vector<2x32xf32>
    %209 = arith.subf %208, %201 : vector<2x32xf32>
    %210 = arith.mulf %209, %207 : vector<2x32xf32>
    %211 = arith.mulf %201, %152 : vector<2x32xf32>
    %212 = arith.addf %210, %211 : vector<2x32xf32>
    %213 = vector.extract_strided_slice %10 {offsets = [6, 0], sizes = [2, 96], strides = [1, 1]} : vector<8x96xf32> to vector<2x96xf32>
    %214 = vector.extract_strided_slice %18 {offsets = [0, 0], sizes = [2, 96], strides = [1, 1]} : vector<8x96xf32> to vector<2x96xf32>
    %215 = arith.truncf %185 : vector<2x32xf32> to vector<2x32xbf16>
    %cst_56 = arith.constant dense<0.000000e+00> : vector<2x96xf32>
    %216 = tpu.matmul %215, %20, %cst_56 {dimension_numbers = #tpu.dot_dimension_numbers<[1], [0], [0], [1], [0, 0, 1, 1], [], []>} : vector<2x32xbf16>, vector<32x96xbf16>, vector<2x96xf32> -> vector<2x96xf32>
    %217 = arith.truncf %212 : vector<2x32xf32> to vector<2x32xbf16>
    %cst_57 = arith.constant dense<0.000000e+00> : vector<2x96xf32>
    %218 = tpu.matmul %217, %22, %cst_57 {dimension_numbers = #tpu.dot_dimension_numbers<[1], [0], [0], [1], [0, 0, 1, 1], [], []>} : vector<2x32xbf16>, vector<32x96xbf16>, vector<2x96xf32> -> vector<2x96xf32>
    %219 = vector.extract_strided_slice %213 {offsets = [0, 0], sizes = [2, 32], strides = [1, 1]} : vector<2x96xf32> to vector<2x32xf32>
    %220 = vector.extract_strided_slice %216 {offsets = [0, 0], sizes = [2, 32], strides = [1, 1]} : vector<2x96xf32> to vector<2x32xf32>
    %221 = arith.addf %219, %220 : vector<2x32xf32>
    %222 = arith.negf %221 : vector<2x32xf32>
    %223 = math.exp %222 : vector<2x32xf32>
    %cst_58 = arith.constant 1.000000e+00 : f32
    %224 = vector.broadcast %cst_58 : f32 to vector<2x32xf32>
    %225 = arith.addf %224, %223 : vector<2x32xf32>
    %226 = arith.divf %224, %225 : vector<2x32xf32>
    %227 = vector.extract_strided_slice %213 {offsets = [0, 32], sizes = [2, 32], strides = [1, 1]} : vector<2x96xf32> to vector<2x32xf32>
    %228 = vector.extract_strided_slice %216 {offsets = [0, 32], sizes = [2, 32], strides = [1, 1]} : vector<2x96xf32> to vector<2x32xf32>
    %229 = arith.addf %227, %228 : vector<2x32xf32>
    %230 = arith.negf %229 : vector<2x32xf32>
    %231 = math.exp %230 : vector<2x32xf32>
    %cst_59 = arith.constant 1.000000e+00 : f32
    %232 = vector.broadcast %cst_59 : f32 to vector<2x32xf32>
    %233 = arith.addf %232, %231 : vector<2x32xf32>
    %234 = arith.divf %232, %233 : vector<2x32xf32>
    %235 = vector.extract_strided_slice %213 {offsets = [0, 64], sizes = [2, 32], strides = [1, 1]} : vector<2x96xf32> to vector<2x32xf32>
    %236 = vector.extract_strided_slice %216 {offsets = [0, 64], sizes = [2, 32], strides = [1, 1]} : vector<2x96xf32> to vector<2x32xf32>
    %237 = arith.addf %236, %26 : vector<2x32xf32>
    %238 = arith.mulf %226, %237 : vector<2x32xf32>
    %239 = arith.addf %235, %238 : vector<2x32xf32>
    %240 = math.tanh %239 : vector<2x32xf32>
    %cst_60 = arith.constant 1.000000e+00 : f32
    %241 = vector.broadcast %cst_60 : f32 to vector<2x32xf32>
    %242 = arith.subf %241, %234 : vector<2x32xf32>
    %243 = arith.mulf %242, %240 : vector<2x32xf32>
    %244 = arith.mulf %234, %185 : vector<2x32xf32>
    %245 = arith.addf %243, %244 : vector<2x32xf32>
    %246 = vector.extract_strided_slice %214 {offsets = [0, 0], sizes = [2, 32], strides = [1, 1]} : vector<2x96xf32> to vector<2x32xf32>
    %247 = vector.extract_strided_slice %218 {offsets = [0, 0], sizes = [2, 32], strides = [1, 1]} : vector<2x96xf32> to vector<2x32xf32>
    %248 = arith.addf %246, %247 : vector<2x32xf32>
    %249 = arith.negf %248 : vector<2x32xf32>
    %250 = math.exp %249 : vector<2x32xf32>
    %cst_61 = arith.constant 1.000000e+00 : f32
    %251 = vector.broadcast %cst_61 : f32 to vector<2x32xf32>
    %252 = arith.addf %251, %250 : vector<2x32xf32>
    %253 = arith.divf %251, %252 : vector<2x32xf32>
    %254 = vector.extract_strided_slice %214 {offsets = [0, 32], sizes = [2, 32], strides = [1, 1]} : vector<2x96xf32> to vector<2x32xf32>
    %255 = vector.extract_strided_slice %218 {offsets = [0, 32], sizes = [2, 32], strides = [1, 1]} : vector<2x96xf32> to vector<2x32xf32>
    %256 = arith.addf %254, %255 : vector<2x32xf32>
    %257 = arith.negf %256 : vector<2x32xf32>
    %258 = math.exp %257 : vector<2x32xf32>
    %cst_62 = arith.constant 1.000000e+00 : f32
    %259 = vector.broadcast %cst_62 : f32 to vector<2x32xf32>
    %260 = arith.addf %259, %258 : vector<2x32xf32>
    %261 = arith.divf %259, %260 : vector<2x32xf32>
    %262 = vector.extract_strided_slice %214 {offsets = [0, 64], sizes = [2, 32], strides = [1, 1]} : vector<2x96xf32> to vector<2x32xf32>
    %263 = vector.extract_strided_slice %218 {offsets = [0, 64], sizes = [2, 32], strides = [1, 1]} : vector<2x96xf32> to vector<2x32xf32>
    %264 = arith.addf %263, %30 : vector<2x32xf32>
    %265 = arith.mulf %253, %264 : vector<2x32xf32>
    %266 = arith.addf %262, %265 : vector<2x32xf32>
    %267 = math.tanh %266 : vector<2x32xf32>
    %cst_63 = arith.constant 1.000000e+00 : f32
    %268 = vector.broadcast %cst_63 : f32 to vector<2x32xf32>
    %269 = arith.subf %268, %261 : vector<2x32xf32>
    %270 = arith.mulf %269, %267 : vector<2x32xf32>
    %271 = arith.mulf %261, %212 : vector<2x32xf32>
    %272 = arith.addf %270, %271 : vector<2x32xf32>
    %c0_64 = arith.constant 0 : index
    %c0_65 = arith.constant 0 : index
    %273 = vector.load %arg8[%c0_64, %c0_65] : memref<2x32xf32, #tpu.memory_space<vmem>>, vector<2x32xf32>
    tpu.vector_store %arg8[%c0_64, %c0_65], %245 {strides = array<i32>} : memref<2x32xf32, #tpu.memory_space<vmem>>, vector<2x32xf32>,
    %c0_66 = arith.constant 0 : index
    %c0_67 = arith.constant 0 : index
    %274 = vector.load %arg9[%c0_66, %c0_67] : memref<2x32xf32, #tpu.memory_space<vmem>>, vector<2x32xf32>
    tpu.vector_store %arg9[%c0_66, %c0_67], %272 {strides = array<i32>} : memref<2x32xf32, #tpu.memory_space<vmem>>, vector<2x32xf32>,
    %c1_i32 = arith.constant 1 : i32
    %275 = arith.cmpi eq, %arg0, %c1_i32 : i32
    %276 = arith.extui %275 : i1 to i32
    %c0_i32_68 = arith.constant 0 : i32
    %277 = arith.cmpi ne, %276, %c0_i32_68 : i32
    scf.if %277 {
      %278 = arith.maximumf %245, %272 : vector<2x32xf32>
      %c0_69 = arith.constant 0 : index
      %c0_70 = arith.constant 0 : index
      %279 = vector.load %arg7[%c0_69, %c0_70] : memref<2x32xf32, #tpu.memory_space<vmem>>, vector<2x32xf32>
      tpu.vector_store %arg7[%c0_69, %c0_70], %278 {strides = array<i32>} : memref<2x32xf32, #tpu.memory_space<vmem>>, vector<2x32xf32>,
    } else {
    }
    return
  }
  func.func @transform_0(%arg0: i32) -> (i32, i32) {
    %c0_i32 = arith.constant 0 : i32
    %c0_i32_0 = arith.constant 0 : i32
    return %arg0, %c0_i32 : i32, i32
  }
  func.func @transform_1(%arg0: i32) -> (i32, i32) {
    %c1_i32 = arith.constant 1 : i32
    %0 = arith.subi %c1_i32, %arg0 : i32
    %c0_i32 = arith.constant 0 : i32
    %c0_i32_0 = arith.constant 0 : i32
    return %0, %c0_i32 : i32, i32
  }
  func.func @transform_2(%arg0: i32) -> (i32, i32, i32) {
    %c0_i32 = arith.constant 0 : i32
    %c0_i32_0 = arith.constant 0 : i32
    %c0_i32_1 = arith.constant 0 : i32
    %c0_i32_2 = arith.constant 0 : i32
    return %c0_i32, %c0_i32_0, %c0_i32_1 : i32, i32, i32
  }
  func.func @transform_3(%arg0: i32) -> (i32, i32, i32) {
    %c0_i32 = arith.constant 0 : i32
    %c0_i32_0 = arith.constant 0 : i32
    %c0_i32_1 = arith.constant 0 : i32
    %c0_i32_2 = arith.constant 0 : i32
    return %c0_i32, %c0_i32_0, %c0_i32_1 : i32, i32, i32
  }
  func.func @transform_4(%arg0: i32) -> (i32, i32, i32) {
    %c0_i32 = arith.constant 0 : i32
    %c0_i32_0 = arith.constant 0 : i32
    %c0_i32_1 = arith.constant 0 : i32
    %c0_i32_2 = arith.constant 0 : i32
    return %c0_i32, %c0_i32_0, %c0_i32_1 : i32, i32, i32
  }
  func.func @transform_5(%arg0: i32) -> (i32, i32, i32) {
    %c0_i32 = arith.constant 0 : i32
    %c0_i32_0 = arith.constant 0 : i32
    %c0_i32_1 = arith.constant 0 : i32
    %c0_i32_2 = arith.constant 0 : i32
    return %c0_i32, %c0_i32_0, %c0_i32_1 : i32, i32, i32
  }
  func.func @transform_6(%arg0: i32) -> (i32, i32) {
    %c0_i32 = arith.constant 0 : i32
    %c0_i32_0 = arith.constant 0 : i32
    %c0_i32_1 = arith.constant 0 : i32
    return %c0_i32, %c0_i32_0 : i32, i32
  }
}

</mosaic_0001>

<bundles_post_ra>
// kernel: tpu_custom_call.1
= control target key start
LH: loop header
LB: loop body
LE: loop exit
PB: predicated region body
PF: predicated region fallthrough
CT: control target
= control target key end

     0   :  { %11 = vsyncpa [#allocation5], 0  ;;  %s2381_s0 = inlined_call_operand.hbm [shape: bf16[16,32], index: 0, kind: input, shape index: {}]   ;;  %s2382_s1 = inlined_call_operand.hbm [shape: bf16[16,32], index: 1, kind: input, shape index: {}]   ;;  %s2383_s2 = inlined_call_operand.hbm [shape: bf16[2,32,96], index: 2, kind: input, shape index: {}]   ;;  %s2384_s3 = inlined_call_operand.hbm [shape: bf16[2,32,96], index: 3, kind: input, shape index: {}]   ;;  %s2385_s4 = inlined_call_operand.vmem [shape: f32[2,1,96], index: 4, kind: input, shape index: {}]   ;;  %s2386_s5 = inlined_call_operand.vmem [shape: f32[2,1,32], index: 5, kind: input, shape index: {}]   ;;  %s2387_s6 = inlined_call_operand.hbm [shape: f32[2,32], index: 6, kind: output, shape index: {}]  }
   0x1   :  { %13 = vsyncpa [#allocation5 + $0x1], 0 }
   0x2   :  { %14 = vsyncpa [#allocation8], 0 }
   0x3   :  { %16 = vsyncpa [#allocation8 + $0x1], 0 }
   0x4   :  { %17 = vsyncpa [#allocation11], 0 }
   0x5   :  { %18 = vsyncpa [#allocation6], 0  ;;  %s1879_s21 = smov 0   ;;  %s1881_s22 = smov 0  }
   0x6   :  { %s1883_s23 = smov 0   ;;  %s1885_s24 = smov 0  }
   0x7   :  { %s1887_s25 = smov 0   ;;  %s1889_s26 = smov 0  }
   0x8   :  { %s1891_s27 = smov 0  }
   0x9 LB: > { %s1830_s28 = smov [#allocation9]   ;;  %s1915_s30 = sadd.s32 4294967295, %s1828_s27   ;;  %s1828_s27 = sphi %s1891_s27, %s2415_s27   ;;  %s1824_s26 = sphi %s1889_s26, %s2414_s26   ;;  %s1820_s25 = sphi %s1887_s25, %s2413_s25   ;;  %s1816_s24 = sphi %s1885_s24, %s2412_s24   ;;  %s1812_s23 = sphi %s1883_s23, %s2411_s23   ;;  %s1808_s22 = sphi %s1881_s22, %s2410_s22   ;;  %s1804_s21 = sphi %s1879_s21, %s2409_s21  }
   0xa   : > { %s200_s29 = sshll.u32 %s1830_s28, 4  ;;  %p1290_p0 = scmp.ge.s32.totalorder %s1828_s27, 1  ;;  %s1921_s29 = int_to_ptr.vmem [resolvable:$true] %s200_s29 }
   0xb   : > { %p2389_p1 = scmp.eq.s32.totalorder %s1915_s30, 0  ;;  %p188_p2 = scmp.lt.s32.totalorder %s1828_s27, 3 }
   0xc   : > { %s1831_s8 = smov [#allocation10]   ;;  %s1612_s13 = scalar_lea.hbm %s2383_s2, 512 }
   0xd   : > { %p1923_p4 = pnand %p1290_p0, %p188_p2  ;;  %s213_s9 = sshll.u32 %s1831_s8, 4  ;;  %s1935_s9 = int_to_ptr.vmem [resolvable:$true] %s213_s9 }
   0xe   : > { %p1613_p7 = scmp.ne.s32.totalorder %s2383_s2, %s1612_s13  ;;  %p1619_p11 = scmp.lt.u32.totalorder %s1612_s13, %s2383_s2 }
   0xf   : > { %p1467_p5 = pneg %p1923_p4 }
  0x11   : > { %p1931_p6 = pnand %p1467_p5, %p2389_p1 }
  0x13   : > { %p1614_p8 = pneg %p1931_p6 }
  0x15   : > { %p1615_p9 = pnand %p1614_p8, %p1613_p7 }
  0x17   : > { %p1616_p10 = pneg %p1615_p9 }
  0x19   : > { %p1621_p12 = pnand %p1619_p11, %p1616_p10 }
  0x1b   : > { %1624 = shalt.err (!%p1621_p12)
}
  0x1c   : > { %s1625_s18 = scalar_lea.vmem %s1921_s29, 512  ;;  %p1633_p5 = scmp.lt.s32.totalorder %s1921_s29, %s1921_s29 }
  0x1d   : > { %p1626_p13 = scmp.ne.s32.totalorder %s1921_s29, %s1625_s18  ;;  %p1634_p7 = scmp.lt.s32.totalorder %s1625_s18, %s1625_s18 }
  0x1f   : > { %p1628_p0 = pnand %p1626_p13, %p1614_p8  ;;  %p1635_p9 = por %p1634_p7, %p1633_p5 }
  0x21   : > { %p1629_p2 = pneg %p1628_p0 }
  0x23   : > { %p1636_p3 = pnand %p1635_p9, %p1629_p2 }
  0x25   : > { %1639 = shalt.err (!%p1636_p3)
}
  0x26   : > { %s1832_s19 = smov 64   ;;  %s1833_s20 = smov 4  }
  0x27   : > { %1470 = dma.hbm_to_vmem [thread:$0]  (!%p1931_p6), %s2383_s2, 512, %s1921_s29, [#allocation8], %s1832_s19, %s1832_s19, %s1833_s20  }
  0x28   : > { %s1640_s13 = scalar_lea.hbm %s2384_s3, 512 }
  0x29   : > { %p1641_p10 = scmp.ne.s32.totalorder %s2384_s3, %s1640_s13  ;;  %p1647_p12 = scmp.lt.u32.totalorder %s1640_s13, %s2384_s3 }
  0x2b   : > { %p1643_p3 = pnand %p1641_p10, %p1614_p8 }
  0x2d   : > { %p1644_p11 = pneg %p1643_p3 }
  0x2f   : > { %p1649_p13 = pnand %p1647_p12, %p1644_p11 }
  0x31   : > { %1652 = shalt.err (!%p1649_p13)
}
  0x32   : > { %s1653_s29 = scalar_lea.vmem %s1935_s9, 512  ;;  %p1661_p7 = scmp.lt.s32.totalorder %s1935_s9, %s1935_s9 }
  0x33   : > { %p1654_p0 = scmp.ne.s32.totalorder %s1935_s9, %s1653_s29  ;;  %p1662_p9 = scmp.lt.s32.totalorder %s1653_s29, %s1653_s29 }
  0x35   : > { %p1656_p2 = pnand %p1654_p0, %p1614_p8  ;;  %p1663_p10 = por %p1662_p9, %p1661_p7 }
  0x37   : > { %p1657_p5 = pneg %p1656_p2 }
  0x39   : > { %p1664_p3 = pnand %p1663_p10, %p1657_p5 }
  0x3b   : > { %1667 = shalt.err (!%p1664_p3)
}
  0x3c   : > { %1473 = dma.hbm_to_vmem [thread:$0]  (!%p1931_p6), %s2384_s3, 512, %s1935_s9, [#allocation11], %s1832_s19, %s1832_s19, %s1833_s20  }
  0x3d   : > { %s31_s8 = sadd.s32 1, %s1824_s26  ;;  %p38_p8 = scmp.ne.s32.totalorder %s1824_s26, %s1820_s25 }
  0x3e   : > { %p2390_p11 = scmp.eq.s32.totalorder %s1828_s27, 0  ;;  %p44_p12 = scmp.ne.s32.totalorder %s1820_s25, %s1816_s24 }
  0x3f   : > { %p2388_p13 = scmp.lt.s32.totalorder %s1828_s27, 2  ;;  %s233_s10 = sand.u32 1, %s1824_s26  }
  0x40   : > { %p40_p0 = por %p2390_p11, %p38_p8  ;;  %p2001_p2 = por %p2389_p1, %p44_p12 }
  0x41   : > { %s1294_s12 = sshll.u32 %s233_s10, 2  ;;  %s1295_s13 = sshll.u32 %s1828_s27, 6 }
  0x42   : > { %s2395_s11 = scalar_select %p2001_p2, 1, 0 }
  0x43   : > { %s2009_s16 = scalar_lea.hbm %s2381_s0, %s1295_s13  ;;  %s237_s24 = scalar_lea.vmem [#allocation4], %s1294_s12 }
  0x44   : > { %s244_s9 = sshll.u32 %s237_s24, 4  ;;  %p2015_p6 = pnand %p2388_p13, %p40_p0  ;;  %s2011_s9 = int_to_ptr.vmem [resolvable:$true] %s244_s9 }
  0x45   : > { %s234_s20 = scalar_lea.sflag [#allocation5], %s233_s10  ;;  %s1668_s17 = scalar_lea.hbm %s2009_s16, 64 }
  0x46   : > { %p1669_p5 = scmp.ne.s32.totalorder %s2009_s16, %s1668_s17  ;;  %p1670_p7 = pneg %p2015_p6 }
  0x47   : > { %s1673_s28 = scalar_lea.hbm %s2381_s0, 128  ;;  %p1674_p3 = scmp.lt.u32.totalorder %s2009_s16, %s2381_s0 }
  0x48   : > { %p1671_p9 = pnand %p1670_p7, %p1669_p5  ;;  %p1675_p8 = scmp.lt.u32.totalorder %s1673_s28, %s1668_s17 }
  0x49   : > { %p1677_p0 = scmp.lt.u32.totalorder %s1668_s17, %s2009_s16 }
  0x4a   : > { %p1672_p10 = pneg %p1671_p9  ;;  %p1676_p12 = por %p1675_p8, %p1674_p3 }
  0x4c   : > { %p1678_p13 = por %p1677_p0, %p1676_p12 }
  0x4e   : > { %p1679_p1 = pnand %p1678_p13, %p1672_p10 }
  0x50   : > { %1682 = shalt.err (!%p1679_p1)
}
  0x51   : > { %s1683_s10 = scalar_lea.vmem %s2011_s9, 64  ;;  %s1834_s14 = smov [#allocation4]  }
  0x52   : > { %p1684_p5 = scmp.ne.s32.totalorder %s2011_s9, %s1683_s10  ;;  %s1688_s15 = sshll.u32 %s1834_s14, 4  ;;  %s1689_s15 = int_to_ptr.vmem [resolvable:$false] %s1688_s15 }
  0x53   : > { %s1690_s24 = scalar_lea.vmem %s1689_s15, 128  ;;  %p1691_p2 = scmp.lt.s32.totalorder %s2011_s9, %s1689_s15 }
  0x54   : > { %p1686_p9 = pnand %p1684_p5, %p1670_p7  ;;  %p1692_p3 = scmp.lt.s32.totalorder %s1690_s24, %s1683_s10 }
  0x56   : > { %p1687_p11 = pneg %p1686_p9  ;;  %p1693_p8 = por %p1692_p3, %p1691_p2 }
  0x58   : > { %p1694_p12 = pnand %p1693_p8, %p1687_p11 }
  0x5a   : > { %1697 = shalt.err (!%p1694_p12)
}
  0x5b   : > { %1477 = dma.hbm_to_vmem [thread:$0]  (!%p2015_p6), %s2009_s16, 64, %s2011_s9, %s234_s20  }
  0x5c   : > { %s2045_s17 = sadd.s32 1, %s1828_s27   ;;  %s54_s29 = ssub.s32 1, %s1828_s27 }
  0x5d   : > { %s28_s19 = ssub.s32 %s1828_s27, %s2045_s17  ;;  %s55_s18 = ssub.s32 1, %s2045_s17 }
  0x5e   : > { %p29_p1 = scmp.eq.s32.totalorder %s28_s19, 0  ;;  %s56_s28 = ssub.s32 %s54_s29, %s55_s18 }
  0x5f   : > { %s59_s12 = sadd.s32 1, %s1812_s23  ;;  %p57_p11 = scmp.eq.s32.totalorder %s56_s28, 0 }
  0x60   : > { %s2055_s13 = scalar_select %p29_p1, %s1824_s26, %s31_s8  }
  0x61   : > { %p66_p13 = scmp.ne.s32.totalorder %s1812_s23, %s1808_s22  ;;  %p72_p2 = scmp.ne.s32.totalorder %s1808_s22, %s1804_s21 }
  0x62   : > { %s251_s10 = sand.u32 1, %s1828_s27   ;;  %p2397_p6 = scmp.eq.s32.totalorder %s1828_s27, 0 }
  0x63   : > { %s2063_s16 = scalar_select %p57_p11, %s1812_s23, %s59_s12  }
  0x64   : > { %p68_p7 = por %p66_p13, %p2397_p6  ;;  %p2398_p10 = scmp.eq.s32.totalorder %s1915_s30, 0 }
  0x65   : > { %s253_s20 = sand.u32 1, %s1812_s23   ;;  %s1297_s15 = sshll.u32 %s54_s29, 6 }
  0x66   : > { %p2069_p0 = por %p72_p2, %p2398_p10  ;;  %s1296_s14 = sshll.u32 %s253_s20, 2 }
  0x67   : > { %s2077_s8 = scalar_lea.hbm %s2382_s1, %s1297_s15  ;;  %s255_s21 = scalar_lea.vmem [#allocation7], %s1296_s14 }
  0x68   : > { %s2399_s9 = scalar_select %p2069_p0, 1, 0 }
  0x69   : > { %s263_s18 = sshll.u32 %s255_s21, 4  ;;  %p2400_p5 = scmp.lt.s32.totalorder %s1828_s27, 2  ;;  %s2085_s18 = int_to_ptr.vmem [resolvable:$true] %s263_s18 }
  0x6a   : > { %s252_s29 = scalar_lea.sflag [#allocation8], %s251_s10  ;;  %s1698_s12 = scalar_lea.hbm %s2077_s8, 64 }
  0x6b   : > { %p2081_p9 = pnand %p2400_p5, %p68_p7  ;;  %p1699_p3 = scmp.ne.s32.totalorder %s2077_s8, %s1698_s12 }
  0x6c   : > { %s1703_s27 = scalar_lea.hbm %s2382_s1, 128  ;;  %p1704_p11 = scmp.lt.u32.totalorder %s2077_s8, %s2382_s1 }
  0x6d   : > { %p1700_p8 = pneg %p2081_p9  ;;  %p1705_p13 = scmp.lt.u32.totalorder %s1703_s27, %s1698_s12 }
  0x6e   : > { %p1707_p6 = scmp.lt.u32.totalorder %s1698_s12, %s2077_s8 }
  0x6f   : > { %p1701_p12 = pnand %p1700_p8, %p1699_p3  ;;  %p1706_p2 = por %p1705_p13, %p1704_p11 }
  0x71   : > { %p1702_p1 = pneg %p1701_p12  ;;  %p1708_p7 = por %p1707_p6, %p1706_p2 }
  0x73   : > { %p1709_p10 = pnand %p1708_p7, %p1702_p1 }
  0x75   : > { %1712 = shalt.err (!%p1709_p10)
}
  0x76   : > { %s1713_s10 = scalar_lea.vmem %s2085_s18, 64  ;;  %s1835_s19 = smov [#allocation7]  }
  0x77   : > { %p1714_p5 = scmp.ne.s32.totalorder %s2085_s18, %s1713_s10  ;;  %s1718_s21 = sshll.u32 %s1835_s19, 4  ;;  %s1719_s21 = int_to_ptr.vmem [resolvable:$false] %s1718_s21 }
  0x78   : > { %s1720_s20 = scalar_lea.vmem %s1719_s21, 128  ;;  %p1721_p0 = scmp.lt.s32.totalorder %s2085_s18, %s1719_s21 }
  0x79   : > { %p1716_p3 = pnand %p1714_p5, %p1700_p8  ;;  %p1722_p11 = scmp.lt.s32.totalorder %s1720_s20, %s1713_s10 }
  0x7b   : > { %p1717_p12 = pneg %p1716_p3  ;;  %p1723_p13 = por %p1722_p11, %p1721_p0 }
  0x7d   : > { %p1724_p2 = pnand %p1723_p13, %p1717_p12 }
  0x7f   : > { %1727 = shalt.err (!%p1724_p2)
}
  0x80   : > { %1480 = dma.hbm_to_vmem [thread:$0]  (!%p2081_p9), %s2077_s8, 64, %s2085_s18, %s252_s29  }
  0x81   : > { %272 = sbr.rel (%p1923_p4) target bundleno = 2996 (0xbb4), region = 44  ;;  %s274_s12 = sand.u32 (!%p1923_p4), 1, %s1820_s25  }
  0x82   : > { %s2115_s14 = sshll.u32 (!%p1923_p4), %s274_s12, 2  ;;  %s275_s27 = scalar_lea.sflag (!%p1923_p4), [#allocation5], %s274_s12 }
  0x83   : > { %s278_s15 = scalar_lea.vmem (!%p1923_p4), [#allocation4], %s2115_s14  ;;  %p2402_p8 = scmp.ne.s32.totalorder (!%p1923_p4), %s2395_s11, 0 }
  0x88   : > { %1783 = dma.done.wait (%p2402_p8), %s275_s27, 64  }
  0x89   : > { %1785 = vsyncadd (%p2402_p8), %s275_s27, 4294967232  ;;  %s283_s8 = sand.u32 1, %s1915_s30   ;;  %s285_s18 = sand.u32 1, %s1808_s22  }
  0x8a   : > { %s2124_s7 = sshll.u32 %s285_s18, 2  ;;  %s284_s28 = scalar_lea.sflag [#allocation8], %s283_s8 }
  0x8b   : > { %s287_s29 = scalar_lea.vmem [#allocation7], %s2124_s7  ;;  %p2403_p4 = scmp.ne.s32.totalorder %s2399_s9, 0 }
  0x8d   : > { %1787 = dma.done.wait (%p2403_p4), %s284_s28, 64  }
  0x8e   : > { %1789 = vsyncadd (%p2403_p4), %s284_s28, 4294967232  ;;  %p2404_p0 = scmp.eq.s32.totalorder %s1915_s30, 0 }
  0x90   : > { %1791 = dma.done.wait (%p2404_p0), [#allocation8], 512   ;;  %p2405_p9 = pmov %p2404_p0 }
  0x91   : > { %p2406_p1 = pmov %p2404_p0 }
  0x92   : > { %1793 = vsyncadd (%p2405_p9), [#allocation8], 4294966784 }
  0x93   : > { %1795 = dma.done.wait (%p2406_p1), [#allocation11], 512   ;;  %p2407_p6 = pmov %p2404_p0 }
  0x94   : > { %p2408_p7 = scmp.ne.s32.totalorder %s1915_s30, 0 }
  0x95   : > { %1797 = vsyncadd (%p2407_p6), [#allocation11], 4294966784  ;;  %vm330_vm0 = vcmask (!%p2408_p7), 254976   ;;  %v1836_v0 = vmov (!%p2408_p7), 0.0  }
  0x96   : > { %329 = sbr.rel (%p2408_p7) target bundleno = 157 (0x9d), region = 64  ;;  %331 = vst.msk [vmem:[#allocation2] sm:$0x3] (!%p2408_p7), %vm330_vm0, %v1836_v0  ;;  %332 = vst.msk [vmem:[#allocation3] sm:$0x3] (!%p2408_p7), %vm330_vm0, %v1836_v0 }
  0x9d PF: > { %v1556_v1 = vld [vmem:[#allocation9] sm:$0xff]   ;;  %v1837_v2 = vmov 0.0   ;;  %v1557_v3 = vld [vmem:[#allocation9 + $0x10] sm:$0xff]   ;;  %v1558_v4 = vld [vmem:[#allocation9 + $0x8] sm:$0xff]   ;;  %vm1838_vm1 = vmmov 0   ;;  %vm357_vm2 = vcmask 261120  }
  0x9e   : > { %1371 = vmatprep.subr.bf16.mxu0 %v1837_v2  ;;  %1379 = vmatprep.subr.bf16.mxu1 %v1837_v2  ;;  %v1559_v5 = vld [vmem:[#allocation9 + $0x18] sm:$0xff]   ;;  %v333_v6 = vld [vmem:[%s278_s15] sm:$0xf]  ;;  %v2151_v8 = vld [vmem:[#allocation10] sm:$0xff]   ;;  %s1839_s24 = smov 64   ;;  %s1840_s27 = smov 32  }
  0x9f   : > { %1372 = vmatpush3.bf16.msra.mxu0 %v1556_v1  ;;  %1375 = vmatprep.mubr.msk.bf16.mxu0 %vm1838_vm1, %v1837_v2  ;;  %v401_v7 = vld [vmem:[%s287_s29] sm:$0xf]  ;;  %v2154_v9 = vld [vmem:[#allocation10 + $0x10] sm:$0xff]   ;;  %v2160_v10 = vld [vmem:[#allocation10 + $0x8] sm:$0xff]   ;;  %s1841_s15 = smov 96   ;;  %vm1170_vm3 = vcmask 261126  }
  0xa0   : > { %1380 = vmatpush3.bf16.msra.mxu1 %v1557_v3  ;;  %1373 = vmatprep.subr.bf16.mxu0 %v1837_v2  ;;  %v2162_v11 = vld [vmem:[#allocation2] sm:$0x3]  ;;  %v2169_v13 = vld [vmem:[#allocation10 + $0x18] sm:$0xff]   ;;  %v2171_v14 = vld [vmem:[#allocation3] sm:$0x3]  ;;  %vm1176_vm4 = vcmask 254976  }
  0xa1   : > { %1381 = vmatprep.subr.bf16.mxu1 %v1837_v2  ;;  %1383 = vmatprep.mubr.msk.bf16.mxu1 %vm1838_vm1, %v1837_v2  ;;  %v1315_v12 = vld [vmem:[%s2386_s5 + $0x1] ss:$0 sm:$0xff]  ;;  %v494_v15 = vpack.c.bf16 %v2162_v11, %v2162_v11  ;;  %v550_v16 = vpack.c.bf16 %v2171_v14, %v2171_v14  ;;  %v1313_v17 = vld [vmem:[%s2386_s5] ss:$0 sm:$0xff]  ;;  %v673_v58 = vrot.slane %v2171_v14, 2  ;;  %p1336_p10 = scmp.ne.s32.totalorder %s1915_s30, 1 }
  0xa2   : > { %650 = vrot.lane.b32.xlu0 %v1315_v12, %s1839_s24  ;;  %v1304_v39 = vld [vmem:[%s2385_s4] ss:$0 sm:$0xff]  ;;  %v1309_v41 = vld [vmem:[%s2385_s4 + $0x1] ss:$0 sm:$0xff]  ;;  %s1842_s8 = smov (!%p1336_p10), 96  }
  0xa3   : > { %1374 = vmatpush3.bf16.msra.mxu0 %v1558_v4 }
  0xa4   : > { %1382 = vmatpush3.bf16.msra.mxu1 %v1559_v5  ;;  %1387 = vmatprep.subr.bf16.mxu0 %v1837_v2 }
  0xa5   : > { %1395 = vmatprep.subr.bf16.mxu1 %v1837_v2 }
  0xa6   : > { %1376 = vmatmul.mubr.msk.bf16.vlgmr.msra.gmra.mrb[0].mxu0 %vm357_vm2, %v333_v6  ;;  %613 = vrot.lane.b32.xlu0 %v1313_v17, %s1839_s24 }
  0xa7   : > { %1384 = vmatmul.mubr.msk.bf16.vlgmr.msra.gmra.mrb[0].mxu1 %vm357_vm2, %v401_v7  ;;  %1388 = vmatpush3.bf16.msra.mxu0 %v2151_v8 }
  0xa8   : > { %1396 = vmatpush3.bf16.msra.mxu1 %v2154_v9  ;;  %1389 = vmatprep.subr.bf16.mxu0 %v1837_v2 }
  0xa9   : > { %1397 = vmatprep.subr.bf16.mxu1 %v1837_v2  ;;  %1391 = vmatprep.mubr.msk.bf16.mxu0 %vm1838_vm1, %v1837_v2 }
  0xaa   : > { %1399 = vmatprep.mubr.msk.bf16.mxu1 %vm1838_vm1, %v1837_v2 }
  0xab   : > { %1390 = vmatpush3.bf16.msra.mxu0 %v2160_v10 }
  0xac   : > { %1398 = vmatpush3.bf16.msra.mxu1 %v2169_v13  ;;  %1403 = vmatprep.subr.bf16.mxu0 %v1837_v2 }
  0xad   : > { %1411 = vmatprep.subr.bf16.mxu1 %v1837_v2 }
  0xae   : > { %1392 = vmatmul.mubr.msk.bf16.vlgmr.msra.gmra.mrb[4].mxu0 %vm357_vm2, %v494_v15 }
  0xaf   : > { %1400 = vmatmul.mubr.msk.bf16.vlgmr.msra.gmra.mrb[4].mxu1 %vm357_vm2, %v550_v16  ;;  %1404 = vmatpush3.bf16.msra.mxu0 %v2151_v8 }
  0xb0   : > { %1405 = vmatprep.subr.bf16.mxu0 %v1837_v2  ;;  %1407 = vmatprep.mubr.msk.bf16.mxu0 %vm1838_vm1, %v1837_v2 }
  0xb1   : > { %1412 = vmatpush3.bf16.msra.mxu1 %v2154_v9  ;;  %1415 = vmatprep.mubr.msk.bf16.mxu1 %vm1838_vm1, %v1837_v2 }
  0xb2   : > { %1413 = vmatprep.subr.bf16.mxu1 %v1837_v2 }
  0xb3   : > { %1406 = vmatpush3.bf16.msra.mxu0 %v2160_v10 }
  0xb4   : > { %1419 = vmatprep.subr.bf16.mxu0 %v1837_v2 }
  0xb5   : > { %1414 = vmatpush3.bf16.msra.mxu1 %v2169_v13 }
  0xb6   : > { %1427 = vmatprep.subr.bf16.mxu1 %v1837_v2 }
 0x114   : > { %v2205_v19 = vpop.permute.xlu0 %650 }
 0x118   : > { %v2207_v27 = vpop.permute.xlu0 %613 }
 0x179   : > { %v395_v18 = vpop.f32.mrb[0].mxu0 }
 0x17a   : > { %v464_v20 = vpop.f32.mrb[0].mxu1  ;;  %v1377_v21 = vpop.f32.mrb[1].mxu0  ;;  %v2216_v40 = vadd.f32 %v1304_v39, %v395_v18 }
 0x17b   : > { %v1385_v22 = vpop.f32.mrb[1].mxu1  ;;  %v398_v23 = vpop.f32.mrb[2].mxu0  ;;  %v2222_v44 = vadd.f32 %v1309_v41, %v464_v20 }
 0x17c   : > { %v467_v24 = vpop.f32.mrb[2].mxu1  ;;  %v1378_v25 = vpop.f32.mrb[3].mxu0 }
 0x17d   : > { %v1386_v26 = vpop.f32.mrb[3].mxu1 }
 0x181   : > { %v544_v28 = vpop.f32.mrb[4].mxu0 }
 0x182   : > { %v600_v29 = vpop.f32.mrb[4].mxu1  ;;  %v1393_v30 = vpop.f32.mrb[5].mxu0  ;;  %v616_v31 = vadd.f32 %v2207_v27, %v544_v28  ;;  %v606_v42 = vadd.f32 %v544_v28, %v2216_v40 }
 0x183   : > { %v653_v32 = vadd.f32 %v2205_v19, %v600_v29  ;;  %v1401_v33 = vpop.f32.mrb[5].mxu1  ;;  %v547_v34 = vpop.f32.mrb[6].mxu0  ;;  %v641_v43 = vrot.slane %v600_v29, 2 }
 0x184   : > { %v603_v35 = vpop.f32.mrb[6].mxu1  ;;  %618 = vrot.lane.b32.xlu1 %v616_v31, %s1839_s24  ;;  %v1394_v36 = vpop.f32.mrb[7].mxu0  ;;  %v1322_v45 = vmul.f32 -1.442695, %v606_v42 }
 0x185   : > { %v1402_v37 = vpop.f32.mrb[7].mxu1  ;;  %v655_v38 = vrot.slane %v653_v32, 2  ;;  %v643_v46 = vadd.f32 %v641_v43, %v2222_v44 }
 0x186   : > { %1564 = vpow2.f32 %v1322_v45 }
 0x187   : > { %v1323_v47 = vmul.f32 -1.442695, %v643_v46 }
 0x188   : > { %656 = vrot.lane.b32.xlu1 %v655_v38, %s1839_s24 }
 0x189   : > { %1566 = vpow2.f32 %v1323_v47 }
 0x190   : > { %v1565_v48 = vpop.eup %1564 }
 0x191   : > { %v610_v49 = vadd.f32 1.0, %v1565_v48 }
 0x193   : > { %v1567_v50 = vpop.eup %1566  ;;  %1568 = vrcp.f32 %v610_v49 }
 0x194   : > { %v647_v51 = vadd.f32 1.0, %v1567_v50 }
 0x196   : > { %1570 = vrcp.f32 %v647_v51 }
 0x19d   : > { %v1569_v52 = vpop.eup %1568 }
 0x19e   : > { %v628_v3 = vsub.f32 1.0, %v1569_v52 }
 0x1a0   : > { %v1571_v55 = vpop.eup %1570 }
 0x1a1   : > { %v666_v12 = vsub.f32 1.0, %v1571_v55 }
 0x1f6   : > { %v619_v53 = vpop.permute.xlu1 %618 }
 0x1f7   : > { %v621_v54 = vmul.f32 %v1569_v52, %v619_v53 }
 0x1f9   : > { %623 = vrot.lane.b32.xlu0 %v621_v54, %s1839_s24 }
 0x1fa   : > { %v657_v56 = vpop.permute.xlu1 %656 }
 0x1fb   : > { %v659_v57 = vmul.f32 %v1571_v55, %v657_v56 }
 0x1fd   : > { %661 = vrot.lane.b32.xlu1 %v659_v57, %s1839_s24 }
 0x201   : > { %635 = vrot.lane.b32.xlu1 %v2162_v11, %s1840_s27 }
 0x205   : > { %674 = vrot.lane.b32.xlu1 %v673_v58, %s1840_s27 }
 0x26b   : > { %v624_v59 = vpop.permute.xlu0 %623 }
 0x26c   : > { %v626_v60 = vadd.f32 %v624_v59, %v2216_v40 }
 0x26e   : > { %1572 = vtanh.f32 %v626_v60 }
 0x26f   : > { %v662_v61 = vpop.permute.xlu1 %661 }
 0x270   : > { %v664_v62 = vadd.f32 %v662_v61, %v2222_v44 }
 0x272   : > { %1574 = vtanh.f32 %v664_v62 }
 0x273   : > { %v636_v1 = vpop.permute.xlu1 %635 }
 0x274   : > { %v638_v5 = vmul.f32 %v1569_v52, %v636_v1 }
 0x277   : > { %v675_v7 = vpop.permute.xlu1 %674 }
 0x278   : > { %v1573_v63 = vpop.eup %1572  ;;  %v677_v15 = vmul.f32 %v1571_v55, %v675_v7 }
 0x279   : > { %630 = vrot.lane.b32.xlu0 %v1573_v63, %s1841_s15 }
 0x27c   : > { %v1575_v0 = vpop.eup %1574 }
 0x27d   : > { %668 = vrot.lane.b32.xlu0 %v1575_v0, %s1841_s15 }
 0x2eb   : > { %v631_v4 = vpop.permute.xlu0 %630 }
 0x2ec   : > { %v633_v6 = vmul.f32 %v631_v4, %v628_v3 }
 0x2ee   : > { %v2233_v11 = vadd.f32 %v638_v5, %v633_v6 }
 0x2ef   : > { %v669_v14 = vpop.permute.xlu0 %668 }
 0x2f0   : > { %v671_v16 = vmul.f32 %v669_v14, %v666_v12  ;;  %v679_v17 = vpack.c.bf16 %v2233_v11, %v2233_v11  ;;  %v804_v61 = vrot.slane %v2233_v11, 6 }
 0x2f2   : > { %v2237_v18 = vadd.f32 %v677_v15, %v671_v16  ;;  %681 = vrot.lane.b32.xlu0 %v679_v17, %s1841_s15 }
 0x2f4   : > { %v726_v20 = vpack.c.bf16 %v2237_v18, %v2237_v18  ;;  %v838_v4 = vrot.slane %v2237_v18, 2 }
 0x2f6   : > { %v728_v21 = vrot.slane %v726_v20, 3 }
 0x2f8   : > { %729 = vrot.lane.b32.xlu1 %v728_v21, %s1841_s15 }
 0x364   : > { %v682_v22 = vpop.permute.xlu0 %681 }
 0x365   : > { %1408 = vmatmul.mubr.msk.bf16.vlgmr.msra.gmra.mrb[8].mxu0 %vm357_vm2, %v682_v22 }
 0x366   : > { %1420 = vmatpush3.bf16.msra.mxu0 %v2151_v8  ;;  %1423 = vmatprep.mubr.msk.bf16.mxu0 %vm1838_vm1, %v1837_v2 }
 0x367   : > { %1421 = vmatprep.subr.bf16.mxu0 %v1837_v2 }
 0x36a   : > { %v730_v23 = vpop.permute.xlu1 %729  ;;  %1422 = vmatpush3.bf16.msra.mxu0 %v2160_v10 }
 0x36b   : > { %1416 = vmatmul.mubr.msk.bf16.vlgmr.msra.gmra.mrb[8].mxu1 %vm357_vm2, %v730_v23  ;;  %1435 = vmatprep.subr.bf16.mxu0 %v1837_v2 }
 0x36c   : > { %1428 = vmatpush3.bf16.msra.mxu1 %v2154_v9  ;;  %1431 = vmatprep.mubr.msk.bf16.mxu1 %vm1838_vm1, %v1837_v2 }
 0x36d   : > { %1429 = vmatprep.subr.bf16.mxu1 %v1837_v2 }
 0x370   : > { %1430 = vmatpush3.bf16.msra.mxu1 %v2169_v13 }
 0x371   : > { %1443 = vmatprep.subr.bf16.mxu1 %v1837_v2 }
 0x438   : > { %v720_v24 = vpop.f32.mrb[8].mxu0 }
 0x439   : > { %v784_v25 = vadd.f32 %v720_v24, %v2207_v27  ;;  %v1409_v26 = vpop.f32.mrb[9].mxu0  ;;  %v775_v37 = vrot.slane %v720_v24, 6 }
 0x43a   : > { %v723_v28 = vpop.f32.mrb[10].mxu0 }
 0x43b   : > { %v786_v29 = vrot.slane %v784_v25, 6  ;;  %v1410_v30 = vpop.f32.mrb[11].mxu0  ;;  %v777_v38 = vadd.f32 %v775_v37, %v2216_v40 }
 0x43d   : > { %787 = vrot.lane.b32.xlu0 %v786_v29, %s1839_s24  ;;  %v1326_v41 = vmul.f32 -1.442695, %v777_v38 }
 0x43e   : > { %v768_v31 = vpop.f32.mrb[8].mxu1 }
 0x43f   : > { %v818_v32 = vadd.f32 %v768_v31, %v2205_v19  ;;  %v1417_v33 = vpop.f32.mrb[9].mxu1  ;;  %v809_v39 = vrot.slane %v768_v31, 4  ;;  %1576 = vpow2.f32 %v1326_v41 }
 0x440   : > { %v771_v34 = vpop.f32.mrb[10].mxu1 }
 0x441   : > { %v820_v35 = vrot.slane %v818_v32, 4  ;;  %v1418_v36 = vpop.f32.mrb[11].mxu1  ;;  %v811_v42 = vadd.f32 %v809_v39, %v2222_v44 }
 0x443   : > { %821 = vrot.lane.b32.xlu1 %v820_v35, %s1839_s24  ;;  %v1327_v43 = vmul.f32 -1.442695, %v811_v42 }
 0x445   : > { %1578 = vpow2.f32 %v1327_v43 }
 0x449   : > { %v1577_v45 = vpop.eup %1576 }
 0x44a   : > { %v781_v46 = vadd.f32 1.0, %v1577_v45 }
 0x44c   : > { %1580 = vrcp.f32 %v781_v46 }
 0x44f   : > { %v1579_v47 = vpop.eup %1578 }
 0x450   : > { %v815_v48 = vadd.f32 1.0, %v1579_v47 }
 0x452   : > { %1582 = vrcp.f32 %v815_v48 }
 0x456   : > { %v1581_v49 = vpop.eup %1580 }
 0x457   : > { %v797_v62 = vsub.f32 1.0, %v1581_v49  ;;  %v806_v0 = vmul.f32 %v1581_v49, %v804_v61 }
 0x45c   : > { %v1583_v52 = vpop.eup %1582 }
 0x45d   : > { %v831_v5 = vsub.f32 1.0, %v1583_v52  ;;  %v840_v12 = vmul.f32 %v1583_v52, %v838_v4 }
 0x4af   : > { %v788_v50 = vpop.permute.xlu0 %787 }
 0x4b0   : > { %v790_v51 = vmul.f32 %v1581_v49, %v788_v50 }
 0x4b2   : > { %792 = vrot.lane.b32.xlu0 %v790_v51, %s1839_s24 }
 0x4b5   : > { %v822_v53 = vpop.permute.xlu1 %821 }
 0x4b6   : > { %v824_v54 = vmul.f32 %v1583_v52, %v822_v53 }
 0x4b8   : > { %826 = vrot.lane.b32.xlu1 %v824_v54, %s1839_s24 }
 0x524   : > { %v793_v55 = vpop.permute.xlu0 %792 }
 0x525   : > { %v795_v56 = vadd.f32 %v793_v55, %v2216_v40 }
 0x527   : > { %1584 = vtanh.f32 %v795_v56 }
 0x52a   : > { %v827_v57 = vpop.permute.xlu1 %826 }
 0x52b   : > { %v829_v58 = vadd.f32 %v827_v57, %v2222_v44 }
 0x52d   : > { %1586 = vtanh.f32 %v829_v58 }
 0x531   : > { %v1585_v59 = vpop.eup %1584 }
 0x532   : > { %799 = vrot.lane.b32.xlu0 %v1585_v59, %s1841_s15 }
 0x537   : > { %v1587_v60 = vpop.eup %1586 }
 0x538   : > { %833 = vrot.lane.b32.xlu1 %v1587_v60, %s1841_s15 }
 0x5a4   : > { %v800_v63 = vpop.permute.xlu0 %799 }
 0x5a5   : > { %v802_v1 = vmul.f32 %v800_v63, %v797_v62 }
 0x5a7   : > { %v2270_v3 = vadd.f32 %v806_v0, %v802_v1 }
 0x5a9   : > { %v842_v6 = vpack.c.bf16 %v2270_v3, %v2270_v3  ;;  %v968_v53 = vrot.slane %v2270_v3, 6 }
 0x5aa   : > { %v834_v7 = vpop.permute.xlu1 %833 }
 0x5ab   : > { %v836_v14 = vmul.f32 %v834_v7, %v831_v5  ;;  %v844_v15 = vrot.slane %v842_v6, 1 }
 0x5ad   : > { %v2275_v16 = vadd.f32 %v840_v12, %v836_v14  ;;  %845 = vrot.lane.b32.xlu0 %v844_v15, %s1841_s15 }
 0x5af   : > { %v890_v11 = vpack.c.bf16 %v2275_v16, %v2275_v16  ;;  %v1002_v59 = vrot.slane %v2275_v16, 2 }
 0x5b1   : > { %v892_v17 = vrot.slane %v890_v11, 2 }
 0x5b3   : > { %893 = vrot.lane.b32.xlu1 %v892_v17, %s1841_s15 }
 0x61f   : > { %v846_v20 = vpop.permute.xlu0 %845 }
 0x620   : > { %1424 = vmatmul.mubr.msk.bf16.vlgmr.msra.gmra.mrb[12].mxu0 %vm357_vm2, %v846_v20 }
 0x621   : > { %1436 = vmatpush3.bf16.msra.mxu0 %v2151_v8  ;;  %1439 = vmatprep.mubr.msk.bf16.mxu0 %vm1838_vm1, %v1837_v2 }
 0x622   : > { %1437 = vmatprep.subr.bf16.mxu0 %v1837_v2 }
 0x625   : > { %v894_v18 = vpop.permute.xlu1 %893  ;;  %1438 = vmatpush3.bf16.msra.mxu0 %v2160_v10 }
 0x626   : > { %1432 = vmatmul.mubr.msk.bf16.vlgmr.msra.gmra.mrb[12].mxu1 %vm357_vm2, %v894_v18 }
 0x627   : > { %1444 = vmatpush3.bf16.msra.mxu1 %v2154_v9  ;;  %1447 = vmatprep.mubr.msk.bf16.mxu1 %vm1838_vm1, %v1837_v2 }
 0x628   : > { %1445 = vmatprep.subr.bf16.mxu1 %v1837_v2 }
 0x62b   : > { %1446 = vmatpush3.bf16.msra.mxu1 %v2169_v13 }
 0x6f3   : > { %v884_v8 = vpop.f32.mrb[12].mxu0 }
 0x6f4   : > { %v948_v21 = vadd.f32 %v884_v8, %v2207_v27  ;;  %v1425_v22 = vpop.f32.mrb[13].mxu0  ;;  %v939_v2 = vrot.slane %v884_v8, 4 }
 0x6f5   : > { %v887_v23 = vpop.f32.mrb[14].mxu0 }
 0x6f6   : > { %v950_v24 = vrot.slane %v948_v21, 4  ;;  %v1426_v25 = vpop.f32.mrb[15].mxu0  ;;  %v941_v13 = vadd.f32 %v939_v2, %v2216_v40 }
 0x6f8   : > { %951 = vrot.lane.b32.xlu0 %v950_v24, %s1839_s24  ;;  %v1330_v32 = vmul.f32 -1.442695, %v941_v13 }
 0x6f9   : > { %v932_v10 = vpop.f32.mrb[12].mxu1 }
 0x6fa   : > { %v982_v26 = vadd.f32 %v932_v10, %v2205_v19  ;;  %v1433_v9 = vpop.f32.mrb[13].mxu1  ;;  %v973_v31 = vrot.slane %v932_v10, 6  ;;  %1588 = vpow2.f32 %v1330_v32 }
 0x6fb   : > { %v935_v28 = vpop.f32.mrb[14].mxu1 }
 0x6fc   : > { %v984_v29 = vrot.slane %v982_v26, 6  ;;  %v1434_v30 = vpop.f32.mrb[15].mxu1  ;;  %v975_v33 = vadd.f32 %v973_v31, %v2222_v44 }
 0x6fe   : > { %985 = vrot.lane.b32.xlu1 %v984_v29, %s1839_s24  ;;  %v1331_v34 = vmul.f32 -1.442695, %v975_v33 }
 0x700   : > { %1590 = vpow2.f32 %v1331_v34 }
 0x704   : > { %v1589_v35 = vpop.eup %1588 }
 0x705   : > { %v945_v36 = vadd.f32 1.0, %v1589_v35 }
 0x707   : > { %1592 = vrcp.f32 %v945_v36 }
 0x70a   : > { %v1591_v37 = vpop.eup %1590 }
 0x70b   : > { %v979_v38 = vadd.f32 1.0, %v1591_v37 }
 0x70d   : > { %1594 = vrcp.f32 %v979_v38 }
 0x711   : > { %v1593_v39 = vpop.eup %1592 }
 0x712   : > { %v961_v54 = vsub.f32 1.0, %v1593_v39  ;;  %v970_v56 = vmul.f32 %v1593_v39, %v968_v53 }
 0x717   : > { %v1595_v43 = vpop.eup %1594 }
 0x718   : > { %v995_v60 = vsub.f32 1.0, %v1595_v43  ;;  %v1004_v63 = vmul.f32 %v1595_v43, %v1002_v59 }
 0x76a   : > { %v952_v41 = vpop.permute.xlu0 %951 }
 0x76b   : > { %v954_v42 = vmul.f32 %v1593_v39, %v952_v41 }
 0x76d   : > { %956 = vrot.lane.b32.xlu0 %v954_v42, %s1839_s24 }
 0x770   : > { %v986_v45 = vpop.permute.xlu1 %985 }
 0x771   : > { %v988_v46 = vmul.f32 %v1595_v43, %v986_v45 }
 0x773   : > { %990 = vrot.lane.b32.xlu1 %v988_v46, %s1839_s24 }
 0x7df   : > { %v957_v47 = vpop.permute.xlu0 %956 }
 0x7e0   : > { %v959_v48 = vadd.f32 %v957_v47, %v2216_v40 }
 0x7e2   : > { %1596 = vtanh.f32 %v959_v48 }
 0x7e5   : > { %v991_v49 = vpop.permute.xlu1 %990 }
 0x7e6   : > { %v993_v50 = vadd.f32 %v991_v49, %v2222_v44 }
 0x7e8   : > { %1598 = vtanh.f32 %v993_v50 }
 0x7ec   : > { %v1597_v51 = vpop.eup %1596 }
 0x7ed   : > { %963 = vrot.lane.b32.xlu0 %v1597_v51, %s1841_s15 }
 0x7f2   : > { %v1599_v52 = vpop.eup %1598 }
 0x7f3   : > { %997 = vrot.lane.b32.xlu1 %v1599_v52, %s1841_s15 }
 0x85f   : > { %v964_v55 = vpop.permute.xlu0 %963 }
 0x860   : > { %v966_v57 = vmul.f32 %v964_v55, %v961_v54 }
 0x862   : > { %v2306_v58 = vadd.f32 %v970_v56, %v966_v57 }
 0x864   : > { %v1006_v61 = vpack.c.bf16 %v2306_v58, %v2306_v58  ;;  %v1132_v39 = vrot.slane %v2306_v58, 6 }
 0x865   : > { %v998_v62 = vpop.permute.xlu1 %997 }
 0x866   : > { %v1000_v0 = vmul.f32 %v998_v62, %v995_v60  ;;  %v1008_v1 = vrot.slane %v1006_v61, 2 }
 0x868   : > { %v2311_v4 = vadd.f32 %v1004_v63, %v1000_v0  ;;  %1009 = vrot.lane.b32.xlu0 %v1008_v1, %s1841_s15 }
 0x86a   : > { %v1054_v3 = vpack.c.bf16 %v2311_v4, %v2311_v4  ;;  %v1162_v46 = vrot.slane %v2311_v4, 2 }
 0x86c   : > { %v1056_v5 = vrot.slane %v1054_v3, 1 }
 0x86e   : > { %1057 = vrot.lane.b32.xlu1 %v1056_v5, %s1841_s15 }
 0x8da   : > { %v1010_v6 = vpop.permute.xlu0 %1009 }
 0x8db   : > { %1440 = vmatmul.mubr.msk.bf16.vlgmr.msra.gmra.mrb[16].mxu0 %vm357_vm2, %v1010_v6 }
 0x8e0   : > { %v1058_v7 = vpop.permute.xlu1 %1057 }
 0x8e1   : > { %1448 = vmatmul.mubr.msk.bf16.vlgmr.msra.gmra.mrb[16].mxu1 %vm357_vm2, %v1058_v7 }
 0x9ae   : > { %v1048_v12 = vpop.f32.mrb[16].mxu0 }
 0x9af   : > { %v1112_v14 = vadd.f32 %v1048_v12, %v2207_v27  ;;  %v1441_v15 = vpop.f32.mrb[17].mxu0  ;;  %v1103_v23 = vrot.slane %v1048_v12, 2 }
 0x9b0   : > { %v1051_v16 = vpop.f32.mrb[18].mxu0 }
 0x9b1   : > { %v1114_v11 = vrot.slane %v1112_v14, 2  ;;  %v1442_v17 = vpop.f32.mrb[19].mxu0  ;;  %v1105_v24 = vadd.f32 %v1103_v23, %v2216_v40 }
 0x9b3   : > { %1115 = vrot.lane.b32.xlu0 %v1114_v11, %s1839_s24  ;;  %v1334_v25 = vmul.f32 -1.442695, %v1105_v24 }
 0x9b4   : > { %v1096_v20 = vpop.f32.mrb[16].mxu1 }
 0x9b5   : > { %v1143_v18 = vadd.f32 %v1096_v20, %v2205_v19  ;;  %v1449_v8 = vpop.f32.mrb[17].mxu1  ;;  %v1136_v27 = vadd.f32 %v1096_v20, %v2222_v44  ;;  %1600 = vpow2.f32 %v1334_v25 }
 0x9b6   : > { %v1099_v21 = vpop.f32.mrb[18].mxu1 }
 0x9b7   : > { %1145 = vrot.lane.b32.xlu1 %v1143_v18, %s1839_s24  ;;  %v1450_v22 = vpop.f32.mrb[19].mxu1  ;;  %v1335_v10 = vmul.f32 -1.442695, %v1136_v27 }
 0x9b9   : > { %1602 = vpow2.f32 %v1335_v10 }
 0x9bf   : > { %v1601_v26 = vpop.eup %1600 }
 0x9c0   : > { %v1109_v9 = vadd.f32 1.0, %v1601_v26 }
 0x9c2   : > { %1604 = vrcp.f32 %v1109_v9 }
 0x9c3   : > { %v1603_v28 = vpop.eup %1602 }
 0x9c4   : > { %v1140_v29 = vadd.f32 1.0, %v1603_v28 }
 0x9c6   : > { %1606 = vrcp.f32 %v1140_v29 }
 0x9cc   : > { %v1605_v19 = vpop.eup %1604 }
 0x9cd   : > { %v1125_v41 = vsub.f32 1.0, %v1605_v19  ;;  %v1134_v43 = vmul.f32 %v1605_v19, %v1132_v39 }
 0x9d0   : > { %v1607_v13 = vpop.eup %1606 }
 0x9d1   : > { %v1155_v47 = vsub.f32 1.0, %v1607_v13  ;;  %v1164_v49 = vmul.f32 %v1607_v13, %v1162_v46 }
 0xa25   : > { %v1116_v30 = vpop.permute.xlu0 %1115 }
 0xa26   : > { %v1118_v2 = vmul.f32 %v1605_v19, %v1116_v30 }
 0xa28   : > { %1120 = vrot.lane.b32.xlu0 %v1118_v2, %s1839_s24 }
 0xa29   : > { %v1146_v31 = vpop.permute.xlu1 %1145 }
 0xa2a   : > { %v1148_v32 = vmul.f32 %v1607_v13, %v1146_v31 }
 0xa2c   : > { %1150 = vrot.lane.b32.xlu1 %v1148_v32, %s1839_s24 }
 0xa9a   : > { %v1121_v33 = vpop.permute.xlu0 %1120 }
 0xa9b   : > { %v1123_v34 = vadd.f32 %v1121_v33, %v2216_v40 }
 0xa9d   : > { %1608 = vtanh.f32 %v1123_v34 }
 0xa9e   : > { %v1151_v35 = vpop.permute.xlu1 %1150 }
 0xa9f   : > { %v1153_v36 = vadd.f32 %v1151_v35, %v2222_v44 }
 0xaa1   : > { %1610 = vtanh.f32 %v1153_v36 }
 0xaa7   : > { %v1609_v37 = vpop.eup %1608 }
 0xaa8   : > { %1127 = vrot.lane.b32.xlu0 %v1609_v37, %s1841_s15 }
 0xaab   : > { %v1611_v38 = vpop.eup %1610 }
 0xaac   : > { %1157 = vrot.lane.b32.xlu1 %v1611_v38, %s1841_s15 }
 0xb1a   : > { %v1128_v42 = vpop.permute.xlu0 %1127 }
 0xb1b   : > { %v1130_v45 = vmul.f32 %v1128_v42, %v1125_v41 }
 0xb1d   : > { %v1135_v40 = vadd.f32 %v1134_v43, %v1130_v45 }
 0xb1e   : > { %v1158_v48 = vpop.permute.xlu1 %1157 }
 0xb1f   : > { %v1160_v44 = vmul.f32 %v1158_v48, %v1155_v47  ;;  %1167 = vrot.lane.b32.xlu0 %v1135_v40, %s1841_s15 }
 0xb21   : > { %v1165_v50 = vadd.f32 %v1164_v49, %v1160_v44 }
 0xb23   : > { %1173 = vrot.lane.b32.xlu1 %v1165_v50, %s1841_s15  ;;  %v1182_v53 = vrot.slane (!%p1336_p10), %v1165_v50, 2 }
 0xb25   : > { %v1184_v54 = vmax.f32 (!%p1336_p10), %v1135_v40, %v1182_v53 }
 0xb27   : > { %1186 = vrot.lane.b32.xlu0 (!%p1336_p10), %v1184_v54, %s1842_s8 }
 0xb90   : > { %1181 = sbr.rel (%p1336_p10) target bundleno = 2971 (0xb9b), region = 68 }
 0xb91   : > { %v1168_v51 = vpop.permute.xlu0 %1167 }
 0xb92   : > { %1171 = vst.msk [vmem:[#allocation2 - $0x6] sm:$0xc0] %vm1170_vm3, %v1168_v51 }
 0xb95   : > { %v1174_v52 = vpop.permute.xlu1 %1173 }
 0xb96   : > { %1177 = vst.msk [vmem:[#allocation3] sm:$0x3] %vm1176_vm4, %v1174_v52 }
 0xb99   : > { %v1187_v55 = vpop.permute.xlu0 %1186 }
 0xb9a   : > { %1189 = vst.msk [vmem:[#allocation12 - $0x6] sm:$0xc0] %vm1170_vm3, %v1187_v55 }
 0xb9b PF: > { %p1486_p5 = scmp.eq.s32.totalorder %s1915_s30, 1  ;;  %s1843_s18 = smov [#allocation12]  }
 0xb9c   : > { %s1197_s7 = sshll.u32 %s1843_s18, 4  ;;  %s1198_s7 = int_to_ptr.vmem [resolvable:$true] %s1197_s7 }
 0xb9d   : > { %s1728_s28 = scalar_lea.vmem %s1198_s7, 32  ;;  %p1735_p13 = scmp.lt.s32.totalorder %s1198_s7, %s1198_s7 }
 0xb9e   : > { %p1729_p3 = scmp.ne.s32.totalorder %s1198_s7, %s1728_s28  ;;  %p1736_p2 = scmp.lt.s32.totalorder %s1728_s28, %s1728_s28 }
 0xba0   : > { %p1730_p12 = pnand %p1729_p3, %p1486_p5  ;;  %p1737_p8 = por %p1736_p2, %p1735_p13 }
 0xba2   : > { %p1731_p11 = pneg %p1730_p12 }
 0xba4   : > { %p1738_p4 = pnand %p1737_p8, %p1731_p11 }
 0xba6   : > { %1741 = shalt.err (!%p1738_p4)
}
 0xba7   : > { %s1742_s9 = scalar_lea.hbm %s2387_s6, 32 }
 0xba8   : > { %p1743_p0 = scmp.ne.s32.totalorder %s2387_s6, %s1742_s9  ;;  %p1748_p6 = scmp.lt.u32.totalorder %s1742_s9, %s2387_s6 }
 0xbaa   : > { %p1744_p9 = pnand %p1743_p0, %p1486_p5 }
 0xbac   : > { %p1745_p1 = pneg %p1744_p9 }
 0xbae   : > { %p1750_p7 = pnand %p1748_p6, %p1745_p1 }
 0xbb0   : > { %1753 = shalt.err (!%p1750_p7)
}
 0xbb1   : > { %1464 = dma.vmem_to_hbm [thread:$0]  (%p1486_p5), %s1198_s7, 32, %s2387_s6, [#allocation6]  }
 0xbb2   : > { %1799 = dma.done.wait (%p1486_p5), [#allocation6], 32  }
 0xbb3   : > { %1801 = vsyncadd (%p1486_p5), [#allocation6], 4294967264 }
 0xbb4 PF: > { %p21_p10 = scmp.ge.s32.totalorder %s2045_s17, 4   ;;  %s2409_s21 = smov %s1808_s22 }
 0xbb5   : > { %s2410_s22 = smov %s1812_s23  ;;  %s2411_s23 = smov %s2063_s16 }
 0xbb6   : > { %s2412_s24 = smov %s1820_s25  ;;  %s2413_s25 = smov %s1824_s26 }
 0xbb7   : > { %s2414_s26 = smov %s2055_s13  ;;  %s2415_s27 = smov %s2045_s17 }
 0xbb8   :  { %23 = sbr.rel (!%p21_p10) target bundleno = 9 (0x9), region = 114 }
 0xbbf   :  { %1210 = vsyncpa [#allocation5], 1 }
 0xbc0   :  { %1212 = vsyncpa [#allocation5 + $0x1], 1 }
 0xbc1   :  { %1213 = vsyncpa [#allocation8], 1 }
 0xbc2   :  { %1215 = vsyncpa [#allocation8 + $0x1], 1 }
 0xbc3   :  { %1216 = vsyncpa [#allocation11], 1 }
 0xbc4   :  { %1217 = vsyncpa [#allocation6], 1 }
 0xbc5   :  { %1219 = vsyncpa [#allocation6 + $0x1], 1 }

</bundles_post_ra>
